<compile_context>
chip_gen: v7x
topology: tpu7x:2x2x1
jax: 0.10.0
libtpu: 0.0.40
codegen_flags: <defaults>
</compile_context>

<pallas_src>
import functools
import math

import numpy as np

import jax
import jax.numpy as jnp
from jax import lax
from jax.experimental import pallas as pl
from jax.experimental.pallas import tpu as pltpu


def _init_dis_block_kernel(x_ref, w1_ref, b1_ref, w2_ref, b2_ref,
                           w3_ref, b3_ref, mask_ref, sel_ref, o_ref,
                           *, W, s):
    # x_ref:    (1, 1, TOT)   f32   lane-dense input block (TOT = bb*H*W)
    # w1_ref:   (Cp, 1)       f32   1x1 "deconv" weight (1 input channel)
    # w2_ref:   (9, Cp, Cp)   bf16  per-tap conv2 weights, (tap, out, in)
    # w3_ref:   (9, Cq, Cp)   bf16  per-tap conv3 weights, (tap, out, in)
    # b*_ref:   (C, 1)        f32
    # mask_ref: (9, 1, TOT)   f32   grid-invariant tap validity (zero-pad) masks
    # sel_ref:  (TOT, PTOT)   f32   0/1 max-pool anchor-compaction matrix
    # o_ref:    (1, Cq, PTOT) f32   lane-dense pooled output block
    TOT = x_ref.shape[-1]

    def lrelu(v):
        return jnp.maximum(v, 0.2 * v)            # LeakyReLU(0.2)

    # Per-tap masks loaded once, shared by both 3x3 convs (hoisted; the mask
    # arithmetic itself was hoisted all the way out to the wrapper).
    masks = [mask_ref[t] for t in range(9)]        # each (1, TOT) f32

    # ---- conv1: equalized 1x1 "deconv", 1 -> Cin (per-pixel affine, VPU) ----
    h1 = lrelu(w1_ref[...] * x_ref[0] + b1_ref[...])           # (Cp, TOT) f32

    def conv3x3(h, w_ref, b_ref):
        # 3x3 / pad 1 conv as nine accumulating matmuls over rolled+masked
        # windows of the in-vreg activation value; bf16 MXU operands with
        # f32 accumulation.  No VMEM scratch, no uninitialized reads.
        acc = None
        for ky in range(3):
            for kx in range(3):
                tap = ky * 3 + kx
                d = (ky - 1) * W + (kx - 1)         # lane offset of this tap
                if d == 0:
                    win = h                         # center tap: mask is all-ones
                else:
                    win = pltpu.roll(h, shift=(-d) % TOT, axis=1) * masks[tap]
                part = jnp.dot(w_ref[tap], win.astype(jnp.bfloat16),
                               preferred_element_type=jnp.float32)
                acc = part if acc is None else acc + part
        return lrelu(acc + b_ref[...])

    h2 = conv3x3(h1, w2_ref, b2_ref)                           # (Cp, TOT) f32
    h3 = conv3x3(h2, w3_ref, b3_ref)                           # (Cq, TOT) f32

    # ---- MaxPool2d(s): roll+max along x, then along y, then one 0/1 -------
    # selection matmul compacts the anchor lanes into (Cq, PTOT).
    mx = h3
    for dx in range(1, s):
        mx = jnp.maximum(mx, pltpu.roll(h3, shift=(-dx) % TOT, axis=1))
    m = mx
    for dy in range(1, s):
        m = jnp.maximum(m, pltpu.roll(mx, shift=(-dy * W) % TOT, axis=1))
    o_ref[0] = jnp.dot(m, sel_ref[...], preferred_element_type=jnp.float32)


def _default_batch_block(B, H, W, Cin, Cout, s, vmem_budget_bytes=20 * 1024 * 1024):
    """Pick bb (images folded per grid step).

    Keeps G = B // bb >= 2 (even G preferred) so the input/output DMA pipeline
    stays double-buffered and the "parallel" grid axis can be split across
    v7x's two TensorCores, while bounding the per-step VMEM working set to a
    v7x-safe budget.  Larger bb (when it fits) amortizes the ~0.35us per-step
    overhead on v5e/v6e.
    """
    Hs, Ws = H // s, W // s
    Cp = -(-Cin // 8) * 8
    Cq = -(-Cout // 8) * 8

    def ws_bytes(bb):
        TOT, PTOT = bb * H * W, bb * Hs * Ws
        blocks = 2 * (TOT + 9 * TOT + TOT * PTOT + Cq * PTOT)  # dbl-buffered in/out
        live = TOT * (2 * Cp + 2 * Cq)                         # f32 activation values
        return 4 * (blocks + live)

    divisors = [bb for bb in range(1, B + 1) if B % bb == 0]
    for need_even_g, need_multi_g in ((True, True), (False, True), (False, False)):
        fits = [bb for bb in divisors
                if (not need_multi_g or B // bb >= 2)
                and (not need_even_g or (B // bb) % 2 == 0)
                and ws_bytes(bb) <= vmem_budget_bytes]
        if fits:
            return max(fits)
    return 1


def init_dis_conv_block(x_nhwc, params, scale_factor, *, batch_block=None):
    """x_nhwc: (B, H, W, 1) float32. Returns (B, H//s, W//s, Cout) float32."""
    w1s, b1, w2s, b2, w3s, b3 = params
    B, H, W, _ = x_nhwc.shape
    Cin = w2s.shape[2]
    Cout = w3s.shape[3]
    s = scale_factor
    assert H % s == 0 and W % s == 0
    Hs, Ws = H // s, W // s

    bb = (_default_batch_block(B, H, W, Cin, Cout, s)
          if batch_block is None else batch_block)
    assert B % bb == 0
    G = B // bb
    TOT = bb * H * W
    PTOT = bb * Hs * Ws
    # NOTE: for best writeback bandwidth keep PTOT a multiple of 128 (true at
    # real ProGAN spatial sizes); a small PTOT only costs a masked tail store.

    # Channels padded to the f32 sublane tile (8); extra channels are zero.
    Cp = -(-Cin // 8) * 8
    Cq = -(-Cout // 8) * 8

    # Lane-dense input: fold (b, y, x) of each batch group into the last dim.
    x_flat = x_nhwc.astype(jnp.float32).reshape(G, 1, TOT)

    # Equalized-LR scale already folded into w*s.  Per-tap weights laid out as
    # (tap, out, in); bf16 MXU operands, f32 biases / 1x1 weight.
    w1_in = jnp.zeros((Cp, 1), jnp.float32).at[:Cin, 0].set(w1s.reshape(Cin))
    b1_in = jnp.zeros((Cp, 1), jnp.float32).at[:Cin, 0].set(b1)
    w2_t = jnp.transpose(w2s, (0, 1, 3, 2)).reshape(9, Cin, Cin)
    w2_in = (jnp.zeros((9, Cp, Cp), jnp.bfloat16)
             .at[:, :Cin, :Cin].set(w2_t.astype(jnp.bfloat16)))
    b2_in = jnp.zeros((Cp, 1), jnp.float32).at[:Cin, 0].set(b2)
    w3_t = jnp.transpose(w3s, (0, 1, 3, 2)).reshape(9, Cout, Cin)
    w3_in = (jnp.zeros((9, Cq, Cp), jnp.bfloat16)
             .at[:, :Cout, :Cin].set(w3_t.astype(jnp.bfloat16)))
    b3_in = jnp.zeros((Cq, 1), jnp.float32).at[:Cout, 0].set(b3)

    # Grid-invariant tap validity masks (zero-padding conv semantics) and the
    # 0/1 max-pool anchor->output selection matrix; built once on the host and
    # passed with constant index_maps (DMA'd once, resident across the grid).
    p = np.arange(TOT)
    r = p % (H * W)
    y, x = r // W, r % W
    img = p // (H * W)
    mask_np = np.empty((9, 1, TOT), np.float32)
    for ky in range(3):
        for kx in range(3):
            dy, dx = ky - 1, kx - 1
            mask_np[ky * 3 + kx, 0] = ((y + dy >= 0) & (y + dy < H) &
                                       (x + dx >= 0) & (x + dx < W))
    anchor = (y % s == 0) & (x % s == 0)
    out_idx = img * (Hs * Ws) + (y // s) * Ws + (x // s)
    sel_np = np.zeros((TOT, PTOT), np.float32)
    sel_np[p[anchor], out_idx[anchor]] = 1.0
    mask_in = jnp.asarray(mask_np)
    sel_in = jnp.asarray(sel_np)

    kernel = functools.partial(_init_dis_block_kernel, W=W, s=s)

    out = pl.pallas_call(
        kernel,
        out_shape=jax.ShapeDtypeStruct((G, Cq, PTOT), jnp.float32),
        grid_spec=pltpu.PrefetchScalarGridSpec(
            num_scalar_prefetch=0,
            grid=(G,),
            in_specs=[
                pl.BlockSpec((1, 1, TOT), lambda g: (g, 0, 0)),
                pl.BlockSpec((Cp, 1), lambda g: (0, 0)),
                pl.BlockSpec((Cp, 1), lambda g: (0, 0)),
                pl.BlockSpec((9, Cp, Cp), lambda g: (0, 0, 0)),
                pl.BlockSpec((Cp, 1), lambda g: (0, 0)),
                pl.BlockSpec((9, Cq, Cp), lambda g: (0, 0, 0)),
                pl.BlockSpec((Cq, 1), lambda g: (0, 0)),
                pl.BlockSpec((9, 1, TOT), lambda g: (0, 0, 0)),
                pl.BlockSpec((TOT, PTOT), lambda g: (0, 0)),
            ],
            out_specs=pl.BlockSpec((1, Cq, PTOT), lambda g: (g, 0, 0)),
        ),
        compiler_params=pltpu.CompilerParams(
            dimension_semantics=("parallel",),       # batch groups -> 2 TCs on v7x
            vmem_limit_bytes=32 * 1024 * 1024,
        ),
    )(x_flat, w1_in, b1_in, w2_in, b2_in, w3_in, b3_in, mask_in, sel_in)

    # (G, Cq, bb*Hs*Ws) -> NHWC (B, Hs, Ws, Cout): free layout plumbing.
    out = out[:, :Cout, :].reshape(G, Cout, bb, Hs, Ws).transpose(0, 2, 3, 4, 1)
    return out.reshape(B, Hs, Ws, Cout)


def _reference(x_nhwc, params, s, *, bf16_matmul=False):
    """Plain-JAX reference of the PyTorch forward (NHWC).

    bf16_matmul=True rounds conv operands to bf16 (f32 accumulation), exactly
    mirroring the kernel's MXU precision so the comparison can stay tight.
    """
    w1s, b1, w2s, b2, w3s, b3 = params
    lrelu = lambda v: jnp.maximum(v, 0.2 * v)
    if bf16_matmul:
        q = lambda t: t.astype(jnp.bfloat16).astype(jnp.float32)
    else:
        q = lambda t: t
    y = lrelu(x_nhwc * w1s.reshape(1, 1, 1, -1) + b1.reshape(1, 1, 1, -1))
    y = lrelu(lax.conv_general_dilated(
        q(y), q(w2s), (1, 1), ((1, 1), (1, 1)),
        dimension_numbers=('NHWC', 'HWIO', 'NHWC'),
        preferred_element_type=jnp.float32) + b2.reshape(1, 1, 1, -1))
    y = lrelu(lax.conv_general_dilated(
        q(y), q(w3s), (1, 1), ((1, 1), (1, 1)),
        dimension_numbers=('NHWC', 'HWIO', 'NHWC'),
        preferred_element_type=jnp.float32) + b3.reshape(1, 1, 1, -1))
    y = lax.reduce_window(y, -jnp.inf, lax.max,
                          (1, s, s, 1), (1, s, s, 1), 'VALID')
    return y


if __name__ == "__main__":
    B, H, W = 2, 16, 16
    in_channels, out_channels, scale_factor = 4, 8, 2

    key = jax.random.PRNGKey(0)
    k1, k2, k3, kx = jax.random.split(key, 4)

    # Equalized-LR layers: weights ~ N(0,1) at init, scaled by sqrt(2/fan_in)
    # at forward time; biases start at 0. Scale folded into the weights.
    w1_raw = jax.random.normal(k1, (in_channels,), jnp.float32)                    # deconv (1, Cin, 1, 1) squeezed
    w2_raw = jax.random.normal(k2, (3, 3, in_channels, in_channels), jnp.float32)  # HWIO
    w3_raw = jax.random.normal(k3, (3, 3, in_channels, out_channels), jnp.float32)
    w1s = w1_raw * math.sqrt(2.0 / 1.0)                    # deconv fan_in = c_in = 1
    w2s = w2_raw * math.sqrt(2.0 / (3 * 3 * in_channels))  # conv fan_in = k*k*c_in
    w3s = w3_raw * math.sqrt(2.0 / (3 * 3 * in_channels))
    b1 = jnp.zeros((in_channels,), jnp.float32)
    b2 = jnp.zeros((in_channels,), jnp.float32)
    b3 = jnp.zeros((out_channels,), jnp.float32)
    params = (w1s, b1, w2s, b2, w3s, b3)

    # PyTorch input would be NCHW (B, 1, H, W); we use NHWC (B, H, W, 1).
    x = jax.random.normal(kx, (B, H, W, 1), jnp.float32)

    out = init_dis_conv_block(x, params, scale_factor)
    out = jax.block_until_ready(out)
    assert out.shape == (B, H // scale_factor, W // scale_factor, out_channels)

    # Tight check against a reference with bf16-rounded conv operands
    # (matches the kernel's bf16 MXU inputs / f32 accumulation).
    ref_bf = _reference(x, params, scale_factor, bf16_matmul=True)
    err_bf = jnp.max(jnp.abs(out - ref_bf))
    assert jnp.allclose(out, ref_bf, atol=2e-2, rtol=2e-2), \
        f"max abs err vs bf16-matched reference: {err_bf}"

    # Coarse sanity check against the pure-f32 reference (bf16 MXU operands
    # introduce ~1% relative error; tolerance relaxed accordingly).
    ref_f32 = _reference(x, params, scale_factor, bf16_matmul=False)
    assert jnp.allclose(out, ref_f32, atol=0.5, rtol=0.25)

    print("KERNEL_OK")
</pallas_src>

<mosaic_0001>
module attributes {stable_mosaic.version = 11 : i64} {
  func.func @_init_dis_block_kernel(%arg0: i32, %arg1: memref<1x1x256xf32, #tpu.memory_space<vmem>>, %arg2: memref<8x1xf32, #tpu.memory_space<vmem>>, %arg3: memref<8x1xf32, #tpu.memory_space<vmem>>, %arg4: memref<9x8x8xbf16, #tpu.memory_space<vmem>>, %arg5: memref<8x1xf32, #tpu.memory_space<vmem>>, %arg6: memref<9x8x8xbf16, #tpu.memory_space<vmem>>, %arg7: memref<8x1xf32, #tpu.memory_space<vmem>>, %arg8: memref<9x1x256xf32, #tpu.memory_space<vmem>>, %arg9: memref<256x64xf32, #tpu.memory_space<vmem>>, %arg10: memref<1x8x64xf32, #tpu.memory_space<vmem>>) attributes {dimension_semantics = [#tpu.dimension_semantics<parallel>], iteration_bounds = array<i64: 2>, scalar_prefetch = 0 : i64, scratch_operands = 0 : i64, tpu.core_type = #tpu.core_type<tc>, window_params = [{transform_indices = @transform_0, window_bounds = array<i64: 1, 1, 256>}, {pipeline_mode = #tpu.pipeline_mode<synchronous>, transform_indices = @transform_1, window_bounds = array<i64: 8, 1>}, {pipeline_mode = #tpu.pipeline_mode<synchronous>, transform_indices = @transform_2, window_bounds = array<i64: 8, 1>}, {pipeline_mode = #tpu.pipeline_mode<synchronous>, transform_indices = @transform_3, window_bounds = array<i64: 9, 8, 8>}, {pipeline_mode = #tpu.pipeline_mode<synchronous>, transform_indices = @transform_4, window_bounds = array<i64: 8, 1>}, {pipeline_mode = #tpu.pipeline_mode<synchronous>, transform_indices = @transform_5, window_bounds = array<i64: 9, 8, 8>}, {pipeline_mode = #tpu.pipeline_mode<synchronous>, transform_indices = @transform_6, window_bounds = array<i64: 8, 1>}, {pipeline_mode = #tpu.pipeline_mode<synchronous>, transform_indices = @transform_7, window_bounds = array<i64: 9, 1, 256>}, {pipeline_mode = #tpu.pipeline_mode<synchronous>, transform_indices = @transform_8, window_bounds = array<i64: 256, 64>}, {transform_indices = @transform_9, window_bounds = array<i64: 1, 8, 64>}]} {
    %c0 = arith.constant 0 : index
    %c0_0 = arith.constant 0 : index
    %c0_1 = arith.constant 0 : index
    %0 = vector.load %arg8[%c0, %c0_0, %c0_1] : memref<9x1x256xf32, #tpu.memory_space<vmem>>, vector<1x1x256xf32>
    %1 = vector.shape_cast %0 : vector<1x1x256xf32> to vector<1x256xf32>
    %c1 = arith.constant 1 : index
    %c0_2 = arith.constant 0 : index
    %c0_3 = arith.constant 0 : index
    %2 = vector.load %arg8[%c1, %c0_2, %c0_3] : memref<9x1x256xf32, #tpu.memory_space<vmem>>, vector<1x1x256xf32>
    %3 = vector.shape_cast %2 : vector<1x1x256xf32> to vector<1x256xf32>
    %c2 = arith.constant 2 : index
    %c0_4 = arith.constant 0 : index
    %c0_5 = arith.constant 0 : index
    %4 = vector.load %arg8[%c2, %c0_4, %c0_5] : memref<9x1x256xf32, #tpu.memory_space<vmem>>, vector<1x1x256xf32>
    %5 = vector.shape_cast %4 : vector<1x1x256xf32> to vector<1x256xf32>
    %c3 = arith.constant 3 : index
    %c0_6 = arith.constant 0 : index
    %c0_7 = arith.constant 0 : index
    %6 = vector.load %arg8[%c3, %c0_6, %c0_7] : memref<9x1x256xf32, #tpu.memory_space<vmem>>, vector<1x1x256xf32>
    %7 = vector.shape_cast %6 : vector<1x1x256xf32> to vector<1x256xf32>
    %c5 = arith.constant 5 : index
    %c0_8 = arith.constant 0 : index
    %c0_9 = arith.constant 0 : index
    %8 = vector.load %arg8[%c5, %c0_8, %c0_9] : memref<9x1x256xf32, #tpu.memory_space<vmem>>, vector<1x1x256xf32>
    %9 = vector.shape_cast %8 : vector<1x1x256xf32> to vector<1x256xf32>
    %c6 = arith.constant 6 : index
    %c0_10 = arith.constant 0 : index
    %c0_11 = arith.constant 0 : index
    %10 = vector.load %arg8[%c6, %c0_10, %c0_11] : memref<9x1x256xf32, #tpu.memory_space<vmem>>, vector<1x1x256xf32>
    %11 = vector.shape_cast %10 : vector<1x1x256xf32> to vector<1x256xf32>
    %c7 = arith.constant 7 : index
    %c0_12 = arith.constant 0 : index
    %c0_13 = arith.constant 0 : index
    %12 = vector.load %arg8[%c7, %c0_12, %c0_13] : memref<9x1x256xf32, #tpu.memory_space<vmem>>, vector<1x1x256xf32>
    %13 = vector.shape_cast %12 : vector<1x1x256xf32> to vector<1x256xf32>
    %c8 = arith.constant 8 : index
    %c0_14 = arith.constant 0 : index
    %c0_15 = arith.constant 0 : index
    %14 = vector.load %arg8[%c8, %c0_14, %c0_15] : memref<9x1x256xf32, #tpu.memory_space<vmem>>, vector<1x1x256xf32>
    %15 = vector.shape_cast %14 : vector<1x1x256xf32> to vector<1x256xf32>
    %c0_16 = arith.constant 0 : index
    %c0_17 = arith.constant 0 : index
    %16 = vector.load %arg2[%c0_16, %c0_17] : memref<8x1xf32, #tpu.memory_space<vmem>>, vector<8x1xf32>
    %c0_18 = arith.constant 0 : index
    %c0_19 = arith.constant 0 : index
    %c0_20 = arith.constant 0 : index
    %17 = vector.load %arg1[%c0_18, %c0_19, %c0_20] : memref<1x1x256xf32, #tpu.memory_space<vmem>>, vector<1x1x256xf32>
    %18 = vector.shape_cast %17 : vector<1x1x256xf32> to vector<1x256xf32>
    %19 = vector.broadcast %16 : vector<8x1xf32> to vector<8x256xf32>
    %20 = vector.broadcast %18 : vector<1x256xf32> to vector<8x256xf32>
    %21 = arith.mulf %19, %20 : vector<8x256xf32>
    %c0_21 = arith.constant 0 : index
    %c0_22 = arith.constant 0 : index
    %22 = vector.load %arg3[%c0_21, %c0_22] : memref<8x1xf32, #tpu.memory_space<vmem>>, vector<8x1xf32>
    %23 = vector.broadcast %22 : vector<8x1xf32> to vector<8x256xf32>
    %24 = arith.addf %21, %23 : vector<8x256xf32>
    %cst = arith.constant 2.000000e-01 : f32
    %25 = vector.broadcast %cst : f32 to vector<8x256xf32>
    %26 = arith.mulf %25, %24 : vector<8x256xf32>
    %27 = arith.maximumf %24, %26 : vector<8x256xf32>
    %c17_i32 = arith.constant 17 : i32
    %28 = tpu.dynamic_rotate %27 by %c17_i32 dim 1 : vector<8x256xf32>, i32 -> vector<8x256xf32>
    %29 = vector.broadcast %1 : vector<1x256xf32> to vector<8x256xf32>
    %30 = arith.mulf %28, %29 : vector<8x256xf32>
    %c0_23 = arith.constant 0 : index
    %c0_24 = arith.constant 0 : index
    %c0_25 = arith.constant 0 : index
    %31 = vector.load %arg4[%c0_23, %c0_24, %c0_25] : memref<9x8x8xbf16, #tpu.memory_space<vmem>>, vector<1x8x8xbf16>
    %32 = vector.shape_cast %31 : vector<1x8x8xbf16> to vector<8x8xbf16>
    %33 = arith.truncf %30 : vector<8x256xf32> to vector<8x256xbf16>
    %cst_26 = arith.constant dense<0.000000e+00> : vector<8x256xf32>
    %34 = tpu.matmul %32, %33, %cst_26 {dimension_numbers = #tpu.dot_dimension_numbers<[1], [0], [0], [1], [0, 0, 1, 1], [], []>} : vector<8x8xbf16>, vector<8x256xbf16>, vector<8x256xf32> -> vector<8x256xf32>
    %c16_i32 = arith.constant 16 : i32
    %35 = tpu.dynamic_rotate %27 by %c16_i32 dim 1 : vector<8x256xf32>, i32 -> vector<8x256xf32>
    %36 = vector.broadcast %3 : vector<1x256xf32> to vector<8x256xf32>
    %37 = arith.mulf %35, %36 : vector<8x256xf32>
    %c1_27 = arith.constant 1 : index
    %c0_28 = arith.constant 0 : index
    %c0_29 = arith.constant 0 : index
    %38 = vector.load %arg4[%c1_27, %c0_28, %c0_29] : memref<9x8x8xbf16, #tpu.memory_space<vmem>>, vector<1x8x8xbf16>
    %39 = vector.shape_cast %38 : vector<1x8x8xbf16> to vector<8x8xbf16>
    %40 = arith.truncf %37 : vector<8x256xf32> to vector<8x256xbf16>
    %cst_30 = arith.constant dense<0.000000e+00> : vector<8x256xf32>
    %41 = tpu.matmul %39, %40, %cst_30 {dimension_numbers = #tpu.dot_dimension_numbers<[1], [0], [0], [1], [0, 0, 1, 1], [], []>} : vector<8x8xbf16>, vector<8x256xbf16>, vector<8x256xf32> -> vector<8x256xf32>
    %42 = arith.addf %34, %41 : vector<8x256xf32>
    %c15_i32 = arith.constant 15 : i32
    %43 = tpu.dynamic_rotate %27 by %c15_i32 dim 1 : vector<8x256xf32>, i32 -> vector<8x256xf32>
    %44 = vector.broadcast %5 : vector<1x256xf32> to vector<8x256xf32>
    %45 = arith.mulf %43, %44 : vector<8x256xf32>
    %c2_31 = arith.constant 2 : index
    %c0_32 = arith.constant 0 : index
    %c0_33 = arith.constant 0 : index
    %46 = vector.load %arg4[%c2_31, %c0_32, %c0_33] : memref<9x8x8xbf16, #tpu.memory_space<vmem>>, vector<1x8x8xbf16>
    %47 = vector.shape_cast %46 : vector<1x8x8xbf16> to vector<8x8xbf16>
    %48 = arith.truncf %45 : vector<8x256xf32> to vector<8x256xbf16>
    %cst_34 = arith.constant dense<0.000000e+00> : vector<8x256xf32>
    %49 = tpu.matmul %47, %48, %cst_34 {dimension_numbers = #tpu.dot_dimension_numbers<[1], [0], [0], [1], [0, 0, 1, 1], [], []>} : vector<8x8xbf16>, vector<8x256xbf16>, vector<8x256xf32> -> vector<8x256xf32>
    %50 = arith.addf %42, %49 : vector<8x256xf32>
    %c1_i32 = arith.constant 1 : i32
    %51 = tpu.dynamic_rotate %27 by %c1_i32 dim 1 : vector<8x256xf32>, i32 -> vector<8x256xf32>
    %52 = vector.broadcast %7 : vector<1x256xf32> to vector<8x256xf32>
    %53 = arith.mulf %51, %52 : vector<8x256xf32>
    %c3_35 = arith.constant 3 : index
    %c0_36 = arith.constant 0 : index
    %c0_37 = arith.constant 0 : index
    %54 = vector.load %arg4[%c3_35, %c0_36, %c0_37] : memref<9x8x8xbf16, #tpu.memory_space<vmem>>, vector<1x8x8xbf16>
    %55 = vector.shape_cast %54 : vector<1x8x8xbf16> to vector<8x8xbf16>
    %56 = arith.truncf %53 : vector<8x256xf32> to vector<8x256xbf16>
    %cst_38 = arith.constant dense<0.000000e+00> : vector<8x256xf32>
    %57 = tpu.matmul %55, %56, %cst_38 {dimension_numbers = #tpu.dot_dimension_numbers<[1], [0], [0], [1], [0, 0, 1, 1], [], []>} : vector<8x8xbf16>, vector<8x256xbf16>, vector<8x256xf32> -> vector<8x256xf32>
    %58 = arith.addf %50, %57 : vector<8x256xf32>
    %c4 = arith.constant 4 : index
    %c0_39 = arith.constant 0 : index
    %c0_40 = arith.constant 0 : index
    %59 = vector.load %arg4[%c4, %c0_39, %c0_40] : memref<9x8x8xbf16, #tpu.memory_space<vmem>>, vector<1x8x8xbf16>
    %60 = vector.shape_cast %59 : vector<1x8x8xbf16> to vector<8x8xbf16>
    %61 = arith.truncf %27 : vector<8x256xf32> to vector<8x256xbf16>
    %cst_41 = arith.constant dense<0.000000e+00> : vector<8x256xf32>
    %62 = tpu.matmul %60, %61, %cst_41 {dimension_numbers = #tpu.dot_dimension_numbers<[1], [0], [0], [1], [0, 0, 1, 1], [], []>} : vector<8x8xbf16>, vector<8x256xbf16>, vector<8x256xf32> -> vector<8x256xf32>
    %63 = arith.addf %58, %62 : vector<8x256xf32>
    %c255_i32 = arith.constant 255 : i32
    %64 = tpu.dynamic_rotate %27 by %c255_i32 dim 1 : vector<8x256xf32>, i32 -> vector<8x256xf32>
    %65 = vector.broadcast %9 : vector<1x256xf32> to vector<8x256xf32>
    %66 = arith.mulf %64, %65 : vector<8x256xf32>
    %c5_42 = arith.constant 5 : index
    %c0_43 = arith.constant 0 : index
    %c0_44 = arith.constant 0 : index
    %67 = vector.load %arg4[%c5_42, %c0_43, %c0_44] : memref<9x8x8xbf16, #tpu.memory_space<vmem>>, vector<1x8x8xbf16>
    %68 = vector.shape_cast %67 : vector<1x8x8xbf16> to vector<8x8xbf16>
    %69 = arith.truncf %66 : vector<8x256xf32> to vector<8x256xbf16>
    %cst_45 = arith.constant dense<0.000000e+00> : vector<8x256xf32>
    %70 = tpu.matmul %68, %69, %cst_45 {dimension_numbers = #tpu.dot_dimension_numbers<[1], [0], [0], [1], [0, 0, 1, 1], [], []>} : vector<8x8xbf16>, vector<8x256xbf16>, vector<8x256xf32> -> vector<8x256xf32>
    %71 = arith.addf %63, %70 : vector<8x256xf32>
    %c241_i32 = arith.constant 241 : i32
    %72 = tpu.dynamic_rotate %27 by %c241_i32 dim 1 : vector<8x256xf32>, i32 -> vector<8x256xf32>
    %73 = vector.broadcast %11 : vector<1x256xf32> to vector<8x256xf32>
    %74 = arith.mulf %72, %73 : vector<8x256xf32>
    %c6_46 = arith.constant 6 : index
    %c0_47 = arith.constant 0 : index
    %c0_48 = arith.constant 0 : index
    %75 = vector.load %arg4[%c6_46, %c0_47, %c0_48] : memref<9x8x8xbf16, #tpu.memory_space<vmem>>, vector<1x8x8xbf16>
    %76 = vector.shape_cast %75 : vector<1x8x8xbf16> to vector<8x8xbf16>
    %77 = arith.truncf %74 : vector<8x256xf32> to vector<8x256xbf16>
    %cst_49 = arith.constant dense<0.000000e+00> : vector<8x256xf32>
    %78 = tpu.matmul %76, %77, %cst_49 {dimension_numbers = #tpu.dot_dimension_numbers<[1], [0], [0], [1], [0, 0, 1, 1], [], []>} : vector<8x8xbf16>, vector<8x256xbf16>, vector<8x256xf32> -> vector<8x256xf32>
    %79 = arith.addf %71, %78 : vector<8x256xf32>
    %c240_i32 = arith.constant 240 : i32
    %80 = tpu.dynamic_rotate %27 by %c240_i32 dim 1 : vector<8x256xf32>, i32 -> vector<8x256xf32>
    %81 = vector.broadcast %13 : vector<1x256xf32> to vector<8x256xf32>
    %82 = arith.mulf %80, %81 : vector<8x256xf32>
    %c7_50 = arith.constant 7 : index
    %c0_51 = arith.constant 0 : index
    %c0_52 = arith.constant 0 : index
    %83 = vector.load %arg4[%c7_50, %c0_51, %c0_52] : memref<9x8x8xbf16, #tpu.memory_space<vmem>>, vector<1x8x8xbf16>
    %84 = vector.shape_cast %83 : vector<1x8x8xbf16> to vector<8x8xbf16>
    %85 = arith.truncf %82 : vector<8x256xf32> to vector<8x256xbf16>
    %cst_53 = arith.constant dense<0.000000e+00> : vector<8x256xf32>
    %86 = tpu.matmul %84, %85, %cst_53 {dimension_numbers = #tpu.dot_dimension_numbers<[1], [0], [0], [1], [0, 0, 1, 1], [], []>} : vector<8x8xbf16>, vector<8x256xbf16>, vector<8x256xf32> -> vector<8x256xf32>
    %87 = arith.addf %79, %86 : vector<8x256xf32>
    %c239_i32 = arith.constant 239 : i32
    %88 = tpu.dynamic_rotate %27 by %c239_i32 dim 1 : vector<8x256xf32>, i32 -> vector<8x256xf32>
    %89 = vector.broadcast %15 : vector<1x256xf32> to vector<8x256xf32>
    %90 = arith.mulf %88, %89 : vector<8x256xf32>
    %c8_54 = arith.constant 8 : index
    %c0_55 = arith.constant 0 : index
    %c0_56 = arith.constant 0 : index
    %91 = vector.load %arg4[%c8_54, %c0_55, %c0_56] : memref<9x8x8xbf16, #tpu.memory_space<vmem>>, vector<1x8x8xbf16>
    %92 = vector.shape_cast %91 : vector<1x8x8xbf16> to vector<8x8xbf16>
    %93 = arith.truncf %90 : vector<8x256xf32> to vector<8x256xbf16>
    %cst_57 = arith.constant dense<0.000000e+00> : vector<8x256xf32>
    %94 = tpu.matmul %92, %93, %cst_57 {dimension_numbers = #tpu.dot_dimension_numbers<[1], [0], [0], [1], [0, 0, 1, 1], [], []>} : vector<8x8xbf16>, vector<8x256xbf16>, vector<8x256xf32> -> vector<8x256xf32>
    %95 = arith.addf %87, %94 : vector<8x256xf32>
    %c0_58 = arith.constant 0 : index
    %c0_59 = arith.constant 0 : index
    %96 = vector.load %arg5[%c0_58, %c0_59] : memref<8x1xf32, #tpu.memory_space<vmem>>, vector<8x1xf32>
    %97 = vector.broadcast %96 : vector<8x1xf32> to vector<8x256xf32>
    %98 = arith.addf %95, %97 : vector<8x256xf32>
    %cst_60 = arith.constant 2.000000e-01 : f32
    %99 = vector.broadcast %cst_60 : f32 to vector<8x256xf32>
    %100 = arith.mulf %99, %98 : vector<8x256xf32>
    %101 = arith.maximumf %98, %100 : vector<8x256xf32>
    %c17_i32_61 = arith.constant 17 : i32
    %102 = tpu.dynamic_rotate %101 by %c17_i32_61 dim 1 : vector<8x256xf32>, i32 -> vector<8x256xf32>
    %103 = vector.broadcast %1 : vector<1x256xf32> to vector<8x256xf32>
    %104 = arith.mulf %102, %103 : vector<8x256xf32>
    %c0_62 = arith.constant 0 : index
    %c0_63 = arith.constant 0 : index
    %c0_64 = arith.constant 0 : index
    %105 = vector.load %arg6[%c0_62, %c0_63, %c0_64] : memref<9x8x8xbf16, #tpu.memory_space<vmem>>, vector<1x8x8xbf16>
    %106 = vector.shape_cast %105 : vector<1x8x8xbf16> to vector<8x8xbf16>
    %107 = arith.truncf %104 : vector<8x256xf32> to vector<8x256xbf16>
    %cst_65 = arith.constant dense<0.000000e+00> : vector<8x256xf32>
    %108 = tpu.matmul %106, %107, %cst_65 {dimension_numbers = #tpu.dot_dimension_numbers<[1], [0], [0], [1], [0, 0, 1, 1], [], []>} : vector<8x8xbf16>, vector<8x256xbf16>, vector<8x256xf32> -> vector<8x256xf32>
    %c16_i32_66 = arith.constant 16 : i32
    %109 = tpu.dynamic_rotate %101 by %c16_i32_66 dim 1 : vector<8x256xf32>, i32 -> vector<8x256xf32>
    %110 = vector.broadcast %3 : vector<1x256xf32> to vector<8x256xf32>
    %111 = arith.mulf %109, %110 : vector<8x256xf32>
    %c1_67 = arith.constant 1 : index
    %c0_68 = arith.constant 0 : index
    %c0_69 = arith.constant 0 : index
    %112 = vector.load %arg6[%c1_67, %c0_68, %c0_69] : memref<9x8x8xbf16, #tpu.memory_space<vmem>>, vector<1x8x8xbf16>
    %113 = vector.shape_cast %112 : vector<1x8x8xbf16> to vector<8x8xbf16>
    %114 = arith.truncf %111 : vector<8x256xf32> to vector<8x256xbf16>
    %cst_70 = arith.constant dense<0.000000e+00> : vector<8x256xf32>
    %115 = tpu.matmul %113, %114, %cst_70 {dimension_numbers = #tpu.dot_dimension_numbers<[1], [0], [0], [1], [0, 0, 1, 1], [], []>} : vector<8x8xbf16>, vector<8x256xbf16>, vector<8x256xf32> -> vector<8x256xf32>
    %116 = arith.addf %108, %115 : vector<8x256xf32>
    %c15_i32_71 = arith.constant 15 : i32
    %117 = tpu.dynamic_rotate %101 by %c15_i32_71 dim 1 : vector<8x256xf32>, i32 -> vector<8x256xf32>
    %118 = vector.broadcast %5 : vector<1x256xf32> to vector<8x256xf32>
    %119 = arith.mulf %117, %118 : vector<8x256xf32>
    %c2_72 = arith.constant 2 : index
    %c0_73 = arith.constant 0 : index
    %c0_74 = arith.constant 0 : index
    %120 = vector.load %arg6[%c2_72, %c0_73, %c0_74] : memref<9x8x8xbf16, #tpu.memory_space<vmem>>, vector<1x8x8xbf16>
    %121 = vector.shape_cast %120 : vector<1x8x8xbf16> to vector<8x8xbf16>
    %122 = arith.truncf %119 : vector<8x256xf32> to vector<8x256xbf16>
    %cst_75 = arith.constant dense<0.000000e+00> : vector<8x256xf32>
    %123 = tpu.matmul %121, %122, %cst_75 {dimension_numbers = #tpu.dot_dimension_numbers<[1], [0], [0], [1], [0, 0, 1, 1], [], []>} : vector<8x8xbf16>, vector<8x256xbf16>, vector<8x256xf32> -> vector<8x256xf32>
    %124 = arith.addf %116, %123 : vector<8x256xf32>
    %c1_i32_76 = arith.constant 1 : i32
    %125 = tpu.dynamic_rotate %101 by %c1_i32_76 dim 1 : vector<8x256xf32>, i32 -> vector<8x256xf32>
    %126 = vector.broadcast %7 : vector<1x256xf32> to vector<8x256xf32>
    %127 = arith.mulf %125, %126 : vector<8x256xf32>
    %c3_77 = arith.constant 3 : index
    %c0_78 = arith.constant 0 : index
    %c0_79 = arith.constant 0 : index
    %128 = vector.load %arg6[%c3_77, %c0_78, %c0_79] : memref<9x8x8xbf16, #tpu.memory_space<vmem>>, vector<1x8x8xbf16>
    %129 = vector.shape_cast %128 : vector<1x8x8xbf16> to vector<8x8xbf16>
    %130 = arith.truncf %127 : vector<8x256xf32> to vector<8x256xbf16>
    %cst_80 = arith.constant dense<0.000000e+00> : vector<8x256xf32>
    %131 = tpu.matmul %129, %130, %cst_80 {dimension_numbers = #tpu.dot_dimension_numbers<[1], [0], [0], [1], [0, 0, 1, 1], [], []>} : vector<8x8xbf16>, vector<8x256xbf16>, vector<8x256xf32> -> vector<8x256xf32>
    %132 = arith.addf %124, %131 : vector<8x256xf32>
    %c4_81 = arith.constant 4 : index
    %c0_82 = arith.constant 0 : index
    %c0_83 = arith.constant 0 : index
    %133 = vector.load %arg6[%c4_81, %c0_82, %c0_83] : memref<9x8x8xbf16, #tpu.memory_space<vmem>>, vector<1x8x8xbf16>
    %134 = vector.shape_cast %133 : vector<1x8x8xbf16> to vector<8x8xbf16>
    %135 = arith.truncf %101 : vector<8x256xf32> to vector<8x256xbf16>
    %cst_84 = arith.constant dense<0.000000e+00> : vector<8x256xf32>
    %136 = tpu.matmul %134, %135, %cst_84 {dimension_numbers = #tpu.dot_dimension_numbers<[1], [0], [0], [1], [0, 0, 1, 1], [], []>} : vector<8x8xbf16>, vector<8x256xbf16>, vector<8x256xf32> -> vector<8x256xf32>
    %137 = arith.addf %132, %136 : vector<8x256xf32>
    %c255_i32_85 = arith.constant 255 : i32
    %138 = tpu.dynamic_rotate %101 by %c255_i32_85 dim 1 : vector<8x256xf32>, i32 -> vector<8x256xf32>
    %139 = vector.broadcast %9 : vector<1x256xf32> to vector<8x256xf32>
    %140 = arith.mulf %138, %139 : vector<8x256xf32>
    %c5_86 = arith.constant 5 : index
    %c0_87 = arith.constant 0 : index
    %c0_88 = arith.constant 0 : index
    %141 = vector.load %arg6[%c5_86, %c0_87, %c0_88] : memref<9x8x8xbf16, #tpu.memory_space<vmem>>, vector<1x8x8xbf16>
    %142 = vector.shape_cast %141 : vector<1x8x8xbf16> to vector<8x8xbf16>
    %143 = arith.truncf %140 : vector<8x256xf32> to vector<8x256xbf16>
    %cst_89 = arith.constant dense<0.000000e+00> : vector<8x256xf32>
    %144 = tpu.matmul %142, %143, %cst_89 {dimension_numbers = #tpu.dot_dimension_numbers<[1], [0], [0], [1], [0, 0, 1, 1], [], []>} : vector<8x8xbf16>, vector<8x256xbf16>, vector<8x256xf32> -> vector<8x256xf32>
    %145 = arith.addf %137, %144 : vector<8x256xf32>
    %c241_i32_90 = arith.constant 241 : i32
    %146 = tpu.dynamic_rotate %101 by %c241_i32_90 dim 1 : vector<8x256xf32>, i32 -> vector<8x256xf32>
    %147 = vector.broadcast %11 : vector<1x256xf32> to vector<8x256xf32>
    %148 = arith.mulf %146, %147 : vector<8x256xf32>
    %c6_91 = arith.constant 6 : index
    %c0_92 = arith.constant 0 : index
    %c0_93 = arith.constant 0 : index
    %149 = vector.load %arg6[%c6_91, %c0_92, %c0_93] : memref<9x8x8xbf16, #tpu.memory_space<vmem>>, vector<1x8x8xbf16>
    %150 = vector.shape_cast %149 : vector<1x8x8xbf16> to vector<8x8xbf16>
    %151 = arith.truncf %148 : vector<8x256xf32> to vector<8x256xbf16>
    %cst_94 = arith.constant dense<0.000000e+00> : vector<8x256xf32>
    %152 = tpu.matmul %150, %151, %cst_94 {dimension_numbers = #tpu.dot_dimension_numbers<[1], [0], [0], [1], [0, 0, 1, 1], [], []>} : vector<8x8xbf16>, vector<8x256xbf16>, vector<8x256xf32> -> vector<8x256xf32>
    %153 = arith.addf %145, %152 : vector<8x256xf32>
    %c240_i32_95 = arith.constant 240 : i32
    %154 = tpu.dynamic_rotate %101 by %c240_i32_95 dim 1 : vector<8x256xf32>, i32 -> vector<8x256xf32>
    %155 = vector.broadcast %13 : vector<1x256xf32> to vector<8x256xf32>
    %156 = arith.mulf %154, %155 : vector<8x256xf32>
    %c7_96 = arith.constant 7 : index
    %c0_97 = arith.constant 0 : index
    %c0_98 = arith.constant 0 : index
    %157 = vector.load %arg6[%c7_96, %c0_97, %c0_98] : memref<9x8x8xbf16, #tpu.memory_space<vmem>>, vector<1x8x8xbf16>
    %158 = vector.shape_cast %157 : vector<1x8x8xbf16> to vector<8x8xbf16>
    %159 = arith.truncf %156 : vector<8x256xf32> to vector<8x256xbf16>
    %cst_99 = arith.constant dense<0.000000e+00> : vector<8x256xf32>
    %160 = tpu.matmul %158, %159, %cst_99 {dimension_numbers = #tpu.dot_dimension_numbers<[1], [0], [0], [1], [0, 0, 1, 1], [], []>} : vector<8x8xbf16>, vector<8x256xbf16>, vector<8x256xf32> -> vector<8x256xf32>
    %161 = arith.addf %153, %160 : vector<8x256xf32>
    %c239_i32_100 = arith.constant 239 : i32
    %162 = tpu.dynamic_rotate %101 by %c239_i32_100 dim 1 : vector<8x256xf32>, i32 -> vector<8x256xf32>
    %163 = vector.broadcast %15 : vector<1x256xf32> to vector<8x256xf32>
    %164 = arith.mulf %162, %163 : vector<8x256xf32>
    %c8_101 = arith.constant 8 : index
    %c0_102 = arith.constant 0 : index
    %c0_103 = arith.constant 0 : index
    %165 = vector.load %arg6[%c8_101, %c0_102, %c0_103] : memref<9x8x8xbf16, #tpu.memory_space<vmem>>, vector<1x8x8xbf16>
    %166 = vector.shape_cast %165 : vector<1x8x8xbf16> to vector<8x8xbf16>
    %167 = arith.truncf %164 : vector<8x256xf32> to vector<8x256xbf16>
    %cst_104 = arith.constant dense<0.000000e+00> : vector<8x256xf32>
    %168 = tpu.matmul %166, %167, %cst_104 {dimension_numbers = #tpu.dot_dimension_numbers<[1], [0], [0], [1], [0, 0, 1, 1], [], []>} : vector<8x8xbf16>, vector<8x256xbf16>, vector<8x256xf32> -> vector<8x256xf32>
    %169 = arith.addf %161, %168 : vector<8x256xf32>
    %c0_105 = arith.constant 0 : index
    %c0_106 = arith.constant 0 : index
    %170 = vector.load %arg7[%c0_105, %c0_106] : memref<8x1xf32, #tpu.memory_space<vmem>>, vector<8x1xf32>
    %171 = vector.broadcast %170 : vector<8x1xf32> to vector<8x256xf32>
    %172 = arith.addf %169, %171 : vector<8x256xf32>
    %cst_107 = arith.constant 2.000000e-01 : f32
    %173 = vector.broadcast %cst_107 : f32 to vector<8x256xf32>
    %174 = arith.mulf %173, %172 : vector<8x256xf32>
    %175 = arith.maximumf %172, %174 : vector<8x256xf32>
    %c255_i32_108 = arith.constant 255 : i32
    %176 = tpu.dynamic_rotate %175 by %c255_i32_108 dim 1 : vector<8x256xf32>, i32 -> vector<8x256xf32>
    %177 = arith.maximumf %175, %176 : vector<8x256xf32>
    %c240_i32_109 = arith.constant 240 : i32
    %178 = tpu.dynamic_rotate %177 by %c240_i32_109 dim 1 : vector<8x256xf32>, i32 -> vector<8x256xf32>
    %179 = arith.maximumf %177, %178 : vector<8x256xf32>
    %c0_110 = arith.constant 0 : index
    %c0_111 = arith.constant 0 : index
    %180 = vector.load %arg9[%c0_110, %c0_111] : memref<256x64xf32, #tpu.memory_space<vmem>>, vector<256x64xf32>
    %cst_112 = arith.constant dense<0.000000e+00> : vector<8x64xf32>
    %181 = tpu.matmul %179, %180, %cst_112 {dimension_numbers = #tpu.dot_dimension_numbers<[1], [0], [0], [1], [0, 0, 1, 1], [], []>} : vector<8x256xf32>, vector<256x64xf32>, vector<8x64xf32> -> vector<8x64xf32>
    %c0_113 = arith.constant 0 : index
    %c0_114 = arith.constant 0 : index
    %c0_115 = arith.constant 0 : index
    %182 = vector.load %arg10[%c0_113, %c0_114, %c0_115] : memref<1x8x64xf32, #tpu.memory_space<vmem>>, vector<1x8x64xf32>
    %183 = vector.shape_cast %182 : vector<1x8x64xf32> to vector<8x64xf32>
    %184 = vector.shape_cast %181 : vector<8x64xf32> to vector<1x8x64xf32>
    tpu.vector_store %arg10[%c0_113, %c0_114, %c0_115], %184 {strides = array<i32>} : memref<1x8x64xf32, #tpu.memory_space<vmem>>, vector<1x8x64xf32>,
    return
  }
  func.func @transform_0(%arg0: i32) -> (i32, i32, i32) {
    %c0_i32 = arith.constant 0 : i32
    %c0_i32_0 = arith.constant 0 : i32
    %c0_i32_1 = arith.constant 0 : i32
    return %arg0, %c0_i32, %c0_i32_0 : i32, i32, i32
  }
  func.func @transform_1(%arg0: i32) -> (i32, i32) {
    %c0_i32 = arith.constant 0 : i32
    %c0_i32_0 = arith.constant 0 : i32
    %c0_i32_1 = arith.constant 0 : i32
    return %c0_i32, %c0_i32_0 : i32, i32
  }
  func.func @transform_2(%arg0: i32) -> (i32, i32) {
    %c0_i32 = arith.constant 0 : i32
    %c0_i32_0 = arith.constant 0 : i32
    %c0_i32_1 = arith.constant 0 : i32
    return %c0_i32, %c0_i32_0 : i32, i32
  }
  func.func @transform_3(%arg0: i32) -> (i32, i32, i32) {
    %c0_i32 = arith.constant 0 : i32
    %c0_i32_0 = arith.constant 0 : i32
    %c0_i32_1 = arith.constant 0 : i32
    %c0_i32_2 = arith.constant 0 : i32
    return %c0_i32, %c0_i32_0, %c0_i32_1 : i32, i32, i32
  }
  func.func @transform_4(%arg0: i32) -> (i32, i32) {
    %c0_i32 = arith.constant 0 : i32
    %c0_i32_0 = arith.constant 0 : i32
    %c0_i32_1 = arith.constant 0 : i32
    return %c0_i32, %c0_i32_0 : i32, i32
  }
  func.func @transform_5(%arg0: i32) -> (i32, i32, i32) {
    %c0_i32 = arith.constant 0 : i32
    %c0_i32_0 = arith.constant 0 : i32
    %c0_i32_1 = arith.constant 0 : i32
    %c0_i32_2 = arith.constant 0 : i32
    return %c0_i32, %c0_i32_0, %c0_i32_1 : i32, i32, i32
  }
  func.func @transform_6(%arg0: i32) -> (i32, i32) {
    %c0_i32 = arith.constant 0 : i32
    %c0_i32_0 = arith.constant 0 : i32
    %c0_i32_1 = arith.constant 0 : i32
    return %c0_i32, %c0_i32_0 : i32, i32
  }
  func.func @transform_7(%arg0: i32) -> (i32, i32, i32) {
    %c0_i32 = arith.constant 0 : i32
    %c0_i32_0 = arith.constant 0 : i32
    %c0_i32_1 = arith.constant 0 : i32
    %c0_i32_2 = arith.constant 0 : i32
    return %c0_i32, %c0_i32_0, %c0_i32_1 : i32, i32, i32
  }
  func.func @transform_8(%arg0: i32) -> (i32, i32) {
    %c0_i32 = arith.constant 0 : i32
    %c0_i32_0 = arith.constant 0 : i32
    %c0_i32_1 = arith.constant 0 : i32
    return %c0_i32, %c0_i32_0 : i32, i32
  }
  func.func @transform_9(%arg0: i32) -> (i32, i32, i32) {
    %c0_i32 = arith.constant 0 : i32
    %c0_i32_0 = arith.constant 0 : i32
    %c0_i32_1 = arith.constant 0 : i32
    return %arg0, %c0_i32, %c0_i32_0 : i32, i32, i32
  }
}

</mosaic_0001>

<bundles_post_ra>
// kernel: tpu_custom_call.1
= control target key start
LH: loop header
LB: loop body
LE: loop exit
PB: predicated region body
PF: predicated region fallthrough
CT: control target
= control target key end

     0   :  { %14 = vsyncpa [#allocation3], 0  ;;  %s2733_s0 = inlined_call_operand.vmem [shape: f32[2,1,256], index: 0, kind: input, shape index: {}]   ;;  %s2734_s1 = inlined_call_operand.vmem [shape: f32[8,1], index: 1, kind: input, shape index: {}]   ;;  %s2735_s2 = inlined_call_operand.vmem [shape: f32[8,1], index: 2, kind: input, shape index: {}]   ;;  %s2736_s3 = inlined_call_operand.vmem [shape: bf16[9,8,8], index: 3, kind: input, shape index: {}]   ;;  %s2737_s4 = inlined_call_operand.vmem [shape: f32[8,1], index: 4, kind: input, shape index: {}]   ;;  %s2738_s5 = inlined_call_operand.vmem [shape: bf16[9,8,8], index: 5, kind: input, shape index: {}]   ;;  %s2739_s6 = inlined_call_operand.vmem [shape: f32[8,1], index: 6, kind: input, shape index: {}]   ;;  %s2740_s7 = inlined_call_operand.vmem [shape: f32[9,1,256], index: 7, kind: input, shape index: {}]   ;;  %s2741_s8 = inlined_call_operand.vmem [shape: f32[256,64], index: 8, kind: input, shape index: {}]   ;;  %s2742_s9 = inlined_call_operand.hbm [shape: f32[2,8,64], index: 9, kind: output, shape index: {}]  }
   0x1   :  { %16 = vsyncpa [#allocation3 + $0x1], 0  ;;  %s2139_s30 = smov 0   ;;  %s2141_s10 = smov 0  }
   0x2   :  { %s2143_s11 = smov 0   ;;  %s2145_s12 = smov 0  }
   0x3 LB: > { %s2160_s13 = sadd.s32 4294967295, %s2077_s12   ;;  %s1819_s14 = sadd.s32 4294967294, %s2077_s12   ;;  %s2077_s12 = sphi %s2145_s12, %s2754_s12   ;;  %s2073_s11 = sphi %s2143_s11, %s2753_s11   ;;  %s2069_s10 = sphi %s2141_s10, %s2752_s10   ;;  %s2065_s30 = sphi %s2139_s30, %s2751_s30  }
   0x4   : > { %s2164_s15 = sadd.s32 1, %s2077_s12   ;;  %s223_s16 = sadd.s32 1, %s2073_s11 }
   0x5   : > { %s220_s17 = ssub.s32 %s2077_s12, %s2164_s15  ;;  %p233_p0 = scmp.ne.s32.totalorder %s2073_s11, %s2069_s10 }
   0x6   : > { %p221_p1 = scmp.eq.s32.totalorder %s220_s17, 0  ;;  %p234_p2 = scmp.eq.s32.totalorder %s2160_s13, 1 }
   0x7   : > { %p239_p3 = scmp.ne.s32.totalorder %s2069_s10, %s2065_s30  ;;  %p240_p4 = scmp.eq.s32.totalorder %s1819_s14, 1 }
   0x8   : > { %s2175_s18 = scalar_select %p221_p1, %s2073_s11, %s223_s16  }
   0x9   : > { %p2177_p5 = por %p234_p2, %p233_p0  ;;  %p2181_p6 = por %p240_p4, %p239_p3 }
   0xa   : > { %p1822_p7 = scmp.ge.s32.totalorder %s2077_s12, 1  ;;  %p289_p8 = scmp.lt.s32.totalorder %s2077_s12, 3 }
   0xc   : > { %p290_p9 = pnand %p1822_p7, %p289_p8 }
   0xd   : > { %v344_v0 = vld [vmem:[%s2734_s1] sm:$0xff] (!%p290_p9)  ;;  %v2079_v1 = vmov (!%p290_p9), 0   ;;  %p324_p10 = scmp.lt.s32.totalorder (!%p290_p9), %s2160_s13, 1  ;;  %v352_v3 = vlaneseq (!%p290_p9)  ;;  %vm429_vm0 = vcmask (!%p290_p9), 1043456   ;;  %s2080_s14 = smov (!%p290_p9), 17   ;;  %vm425_vm1 = vcmask (!%p290_p9), 64512  }
   0xe   : > { %293 = sbr.rel (%p290_p9) target bundleno = 1395 (0x573), region = 56  ;;  %2003 = vset.pattern.permute.xlu0 (!%p290_p9), %v2079_v1  ;;  %468 = vmatprep.mubr.bf16.mxu1 (!%p290_p9), %v2079_v1  ;;  %v364_v2 = vld [vmem:[%s2735_s2] sm:$0xff] (!%p290_p9)  ;;  %s2081_s16 = smov (!%p290_p9), 16   ;;  %v1843_v23 = vld [vmem:[%s2736_s3 + $0x10] sm:$0xf] (!%p290_p9)  ;;  %vm1744_vm10 = vcmask (!%p290_p9), 523264  }
   0xf   : > { %348 = vperm.xlu0 (!%p290_p9), %2003, %v344_v0   ;;  %724 = vmatprep.mubr.bf16.mxu0 (!%p290_p9), %v2079_v1  ;;  %v353_v4 = vshrl.u32 (!%p290_p9), %v352_v3, 7  ;;  %s2082_s17 = smov (!%p290_p9), 15   ;;  %s2083_s21 = smov (!%p290_p9), 1   ;;  %v1039_v24 = vld [vmem:[%s2737_s4] sm:$0xff] (!%p290_p9)  ;;  %v2234_v25 = vand.u32 (!%p290_p9), 127, %v352_v3 }
  0x10   : > { %2004 = vset.pattern.permute.xlu1 (!%p290_p9), %v2079_v1  ;;  %s2084_s22 = smov (!%p290_p9), 127   ;;  %s2085_s23 = smov (!%p290_p9), 113   ;;  %v1825_v26 = vld [vmem:[%s2740_s7 + $0x2] sm:$0x3] (!%p290_p9)  ;;  %v329_v31 = vld [vmem:[%s2740_s7] sm:$0x3] (!%p290_p9) }
  0x11   : > { %v2202_v5 = vsub.s32 (!%p290_p9), 0, %v353_v4  ;;  %v2204_v6 = vsub.s32 (!%p290_p9), 1, %v353_v4  ;;  %s2743_s27 = smov (!%p290_p9), 111   ;;  %vm405_vm2 = vcmp.lt.s32.totalorder (!%p290_p9), %v2234_v25, 16  ;;  %vm382_vm3 = vcmp.lt.s32.totalorder (!%p290_p9), %v2234_v25, 17 }
  0x12   : > { %v1826_v40 = vld [vmem:[%s2740_s7 + $0x4] sm:$0x3] (!%p290_p9)  ;;  %vm531_vm4 = vcmp.lt.s32.totalorder (!%p290_p9), %v2234_v25, 15  ;;  %v1827_v53 = vld [vmem:[%s2740_s7 + $0x6] sm:$0x3] (!%p290_p9)  ;;  %vm607_vm5 = vcmp.lt.s32.totalorder (!%p290_p9), %v2234_v25, 1 }
  0x13   : > { %367 = vperm.xlu0 (!%p290_p9), %2003, %v364_v2   ;;  %v2241_v29 = vrot.slane (!%p290_p9), %v1825_v26, %v2202_v5  ;;  %v2244_v30 = vrot.slane (!%p290_p9), %v1825_v26, %v2204_v6  ;;  %v2256_v37 = vrot.slane (!%p290_p9), %v329_v31, %v2202_v5  ;;  %v2259_v38 = vrot.slane (!%p290_p9), %v329_v31, %v2204_v6  ;;  %v1832_v52 = vld [vmem:[%s2736_s3 + $0x4] sm:$0xf] (!%p290_p9) }
  0x14   : > { %v2271_v47 = vrot.slane (!%p290_p9), %v1826_v40, %v2202_v5  ;;  %v2278_v51 = vrot.slane (!%p290_p9), %v1826_v40, %v2204_v6  ;;  %v2297_v63 = vrot.slane (!%p290_p9), %v1827_v53, %v2204_v6  ;;  %vm739_vm6 = vcmp.lt.s32.totalorder (!%p290_p9), %v2234_v25, 127 }
  0x15   : > { %s325_s25 = scalar_select %p324_p10, %s2160_s13, 1  ;;  %vm815_vm7 = vcmp.lt.s32.totalorder %v2234_v25, 113  ;;  %vm891_vm8 = vcmp.lt.s32.totalorder %v2234_v25, 112  ;;  %vm967_vm9 = vcmp.lt.s32.totalorder %v2234_v25, 111 }
  0x17   : > { %s1824_s26 = sshll.u32 %s325_s25, 1 }
  0x18   : > { %s327_s29 = scalar_lea.vmem %s2733_s0, %s1824_s26  ;;  %s2745_s26 = smov 112  }
  0x19   : > { %v345_v7 = vld [vmem:[%s327_s29] sm:$0x3] }
  0x1a   : > { %v355_v8 = vrot.slane %v345_v7, %v2202_v5  ;;  %v359_v9 = vrot.slane %v345_v7, %v2204_v6  ;;  %v2303_v7 = vrot.slane %v1827_v53, %v2202_v5 }
  0x8e   : > { %v349_v10 = vpop.permute.xlu0 %348 }
  0x8f   : > { %v362_v11 = vmul.f32 %v355_v8, %v349_v10  ;;  %v363_v12 = vmul.f32 %v359_v9, %v349_v10  ;;  %v1828_v9 = vld [vmem:[%s2740_s7 + $0xa] sm:$0x3] }
  0x92   : > { %v368_v13 = vpop.permute.xlu0 %367 }
  0x93   : > { %v370_v14 = vadd.f32 %v368_v13, %v362_v11  ;;  %v371_v15 = vadd.f32 %v368_v13, %v363_v12  ;;  %v398_v11 = vld [vmem:[%s2736_s3] sm:$0xf]  ;;  %v1829_v12 = vld [vmem:[%s2740_s7 + $0xc] sm:$0x3] }
  0x95   : > { %v372_v16 = vmul.f32 0.2, %v370_v14  ;;  %v373_v17 = vmul.f32 0.2, %v371_v15 }
  0x97   : > { %v374_v18 = vmax.f32 %v370_v14, %v372_v16  ;;  %v375_v19 = vmax.f32 %v371_v15, %v373_v17  ;;  %v2320_v16 = vrot.slane %v1828_v9, %v2204_v6 }
  0x99   : > { %376 = vrot.lane.b32.xlu0 %v374_v18, %s2080_s14  ;;  %401 = vrot.lane.b32.xlu1 %v374_v18, %s2081_s16  ;;  %v682_v20 = vpack.c.bf16 %v375_v19, %v375_v19  ;;  %v681_v21 = vpack.c.bf16 %v374_v18, %v374_v18 }
  0x9b   : > { %1844 = vmatprep.subr.msk.bf16.mxu0 %vm429_vm0, %v682_v20  ;;  %v687_v22 = vsel %vm429_vm0, %v681_v21, 0  ;;  %v2330_v20 = vrot.slane %v1829_v12, %v2204_v6 }
  0x9c   : > { %693 = vmatpush1.bf16.msra.mxu0 %v687_v22 }
  0x9d   : > { %527 = vrot.lane.b32.xlu0 %v374_v18, %s2082_s17  ;;  %403 = vrot.lane.b32.xlu1 %v375_v19, %s2081_s16 }
  0x9f   : > { %1845 = vmatmul.mubr.msk.bf16.vlgmr.msra.gmra.mrb[0].mxu0 %vm425_vm1, %v1843_v23  ;;  %v2337_v23 = vrot.slane %v1828_v9, %v2202_v5 }
  0xa0   : > { %876 = vmatprep.mubr.bf16.mxu0 %v2079_v1 }
  0xa1   : > { %603 = vrot.lane.b32.xlu0 %v374_v18, %s2083_s21  ;;  %378 = vrot.lane.b32.xlu1 %v375_v19, %s2080_s14 }
  0xa5   : > { %735 = vrot.lane.b32.xlu0 %v374_v18, %s2084_s22  ;;  %529 = vrot.lane.b32.xlu1 %v375_v19, %s2082_s17 }
  0xa9   : > { %811 = vrot.lane.b32.xlu0 %v374_v18, %s2085_s23  ;;  %605 = vrot.lane.b32.xlu1 %v375_v19, %s2083_s21 }
  0xad   : > { %887 = vrot.lane.b32.xlu0 %v374_v18, %s2745_s26  ;;  %737 = vrot.lane.b32.xlu1 %v375_v19, %s2084_s22 }
  0xb1   : > { %963 = vrot.lane.b32.xlu0 %v374_v18, %s2743_s27  ;;  %813 = vrot.lane.b32.xlu1 %v375_v19, %s2085_s23 }
  0xb5   : > { %1042 = vperm.xlu0 %2003, %v1039_v24   ;;  %889 = vrot.lane.b32.xlu1 %v375_v19, %s2745_s26 }
  0xb9   : > { %965 = vrot.lane.b32.xlu1 %v375_v19, %s2743_s27  ;;  %v2327_v19 = vrot.slane %v1829_v12, %v2202_v5  ;;  %v1846_v12 = vld [vmem:[%s2736_s3 + $0x14] sm:$0xf] }
 0x10b   : > { %v377_v27 = vpop.permute.xlu0 %376  ;;  %v402_v28 = vpop.permute.xlu1 %401 }
 0x10f   : > { %v528_v32 = vpop.permute.xlu0 %527  ;;  %v404_v33 = vpop.permute.xlu1 %403 }
 0x110   : > { %v406_v34 = vsel %vm405_vm2, %v402_v28, %v404_v33  ;;  %v407_v35 = vsel %vm405_vm2, %v404_v33, %v402_v28 }
 0x111   : > { %v419_v36 = vmul.f32 %v2241_v29, %v407_v35  ;;  %v420_v39 = vmul.f32 %v2244_v30, %v406_v34  ;;  %v1830_v34 = vld [vmem:[%s2740_s7 + $0xe] sm:$0x3]  ;;  %v1831_v35 = vld [vmem:[%s2740_s7 + $0x10] sm:$0x3] }
 0x113   : > { %v604_v41 = vpop.permute.xlu0 %603  ;;  %v379_v42 = vpop.permute.xlu1 %378  ;;  %v424_v43 = vpack.c.bf16 %v420_v39, %v420_v39  ;;  %v423_v44 = vpack.c.bf16 %v419_v36, %v419_v36  ;;  %v1837_v39 = vld [vmem:[%s2736_s3 + $0x8] sm:$0xf] }
 0x114   : > { %v383_v45 = vsel %vm382_vm3, %v377_v27, %v379_v42  ;;  %v384_v46 = vsel %vm382_vm3, %v379_v42, %v377_v27 }
 0x115   : > { %v396_v48 = vmul.f32 %v2256_v37, %v384_v46  ;;  %v397_v49 = vmul.f32 %v2259_v38, %v383_v45  ;;  %1833 = vmatprep.subr.msk.bf16.mxu1 %vm429_vm0, %v424_v43  ;;  %v431_v50 = vsel %vm429_vm0, %v423_v44, 0  ;;  %v2359_v43 = vrot.slane %v1830_v34, %v2204_v6 }
 0x116   : > { %437 = vmatpush1.bf16.msra.mxu1 %v431_v50  ;;  %v2363_v44 = vrot.slane %v1831_v35, %v2202_v5  ;;  %v2366_v45 = vrot.slane %v1831_v35, %v2204_v6  ;;  %v1849_v6 = vld [vmem:[%s2736_s3 + $0x18] sm:$0xf] }
 0x117   : > { %v399_v54 = vpack.c.bf16 %v396_v48, %v396_v48  ;;  %v400_v55 = vpack.c.bf16 %v397_v49, %v397_v49  ;;  %v530_v56 = vpop.permute.xlu1 %529  ;;  %v736_v59 = vpop.permute.xlu0 %735 }
 0x118   : > { %v532_v57 = vsel %vm531_vm4, %v528_v32, %v530_v56  ;;  %v533_v58 = vsel %vm531_vm4, %v530_v56, %v528_v32 }
 0x119   : > { %v545_v60 = vmul.f32 %v2271_v47, %v533_v58  ;;  %v546_v61 = vmul.f32 %v2278_v51, %v532_v57  ;;  %1834 = vmatmul.mubr.msk.bf16.vlgmr.msra.gmra.mrb[0].mxu1 %vm425_vm1, %v1832_v52  ;;  %1835 = vmatprep.subr.msk.bf16.mxu1 %vm429_vm0, %v400_v55  ;;  %v481_v62 = vsel %vm429_vm0, %v399_v54, 0  ;;  %v2381_v55 = vrot.slane %v1830_v34, %v2202_v5  ;;  %v1840_v5 = vld [vmem:[%s2736_s3 + $0xc] sm:$0xf] }
 0x11a   : > { %487 = vmatpush1.bf16.msra.mxu1 %v481_v62  ;;  %518 = vmatprep.mubr.bf16.mxu1 %v2079_v1 }
 0x11b   : > { %v550_v0 = vpack.c.bf16 %v546_v61, %v546_v61  ;;  %v606_v2 = vpop.permute.xlu1 %605  ;;  %v549_v4 = vpack.c.bf16 %v545_v60, %v545_v60  ;;  %v812_v13 = vpop.permute.xlu0 %811 }
 0x11c   : > { %v608_v3 = vsel %vm607_vm5, %v604_v41, %v606_v2  ;;  %v609_v10 = vsel %vm607_vm5, %v606_v2, %v604_v41 }
 0x11d   : > { %v622_v8 = vmul.f32 %v2297_v63, %v608_v3  ;;  %1838 = vmatprep.subr.msk.bf16.mxu1 %vm429_vm0, %v550_v0  ;;  %v621_v17 = vmul.f32 %v2303_v7, %v609_v10  ;;  %v555_v18 = vsel %vm429_vm0, %v549_v4, 0  ;;  %v1855_v10 = vld [vmem:[%s2736_s3 + $0x20] sm:$0xf] }
 0x11f   : > { %v626_v14 = vpack.c.bf16 %v622_v8, %v622_v8  ;;  %v738_v15 = vpop.permute.xlu1 %737  ;;  %v625_v27 = vpack.c.bf16 %v621_v17, %v621_v17  ;;  %v888_v28 = vpop.permute.xlu0 %887 }
 0x120   : > { %v741_v21 = vsel %vm739_vm6, %v738_v15, %v736_v59  ;;  %v740_v36 = vsel %vm739_vm6, %v736_v59, %v738_v15 }
 0x121   : > { %1836 = vmatmul.mubr.msk.bf16.vlgmr.msra.gmra.mrb[4].mxu1 %vm425_vm1, %v398_v11  ;;  %v754_v31 = vmul.f32 %v2320_v16, %v741_v21  ;;  %v753_v46 = vmul.f32 %v2337_v23, %v740_v36  ;;  %v631_v49 = vsel %vm429_vm0, %v625_v27, 0 }
 0x122   : > { %561 = vmatpush1.bf16.msra.mxu1 %v555_v18  ;;  %592 = vmatprep.mubr.bf16.mxu1 %v2079_v1 }
 0x123   : > { %1841 = vmatprep.subr.msk.bf16.mxu1 %vm429_vm0, %v626_v14  ;;  %v814_v22 = vpop.permute.xlu1 %813  ;;  %v758_v48 = vpack.c.bf16 %v754_v31, %v754_v31  ;;  %v964_v53 = vpop.permute.xlu0 %963  ;;  %v757_v58 = vpack.c.bf16 %v753_v46, %v753_v46  ;;  %v1852_v14 = vld [vmem:[%s2736_s3 + $0x1c] sm:$0xf] }
 0x124   : > { %v816_v24 = vsel %vm815_vm7, %v812_v13, %v814_v22  ;;  %v817_v26 = vsel %vm815_vm7, %v814_v22, %v812_v13 }
 0x125   : > { %v829_v32 = vmul.f32 %v2327_v19, %v816_v24  ;;  %v830_v33 = vmul.f32 %v2330_v20, %v817_v26  ;;  %v763_v8 = vsel %vm429_vm0, %v757_v58, 0 }
 0x127   : > { %v833_v40 = vpack.c.bf16 %v829_v32, %v829_v32  ;;  %v834_v41 = vpack.c.bf16 %v830_v33, %v830_v33  ;;  %v890_v42 = vpop.permute.xlu1 %889 }
 0x128   : > { %v893_v52 = vsel %vm891_vm8, %v890_v42, %v888_v28  ;;  %v892_v62 = vsel %vm891_vm8, %v888_v28, %v890_v42 }
 0x129   : > { %1839 = vmatmul.mubr.msk.bf16.vlgmr.msra.gmra.mrb[8].mxu1 %vm425_vm1, %v1837_v39  ;;  %1850 = vmatprep.subr.msk.bf16.mxu0 %vm429_vm0, %v834_v41  ;;  %v839_v50 = vsel %vm429_vm0, %v833_v40, 0  ;;  %v906_v59 = vmul.f32 %v2359_v43, %v893_v52  ;;  %v905_v3 = vmul.f32 %v2381_v55, %v892_v62 }
 0x12a   : > { %637 = vmatpush1.bf16.msra.mxu1 %v631_v49  ;;  %845 = vmatpush1.bf16.msra.mxu0 %v839_v50 }
 0x12b   : > { %1847 = vmatprep.subr.msk.bf16.mxu1 %vm429_vm0, %v758_v48  ;;  %v966_v54 = vpop.permute.xlu1 %965  ;;  %668 = vmatprep.mubr.bf16.mxu1 %v2079_v1  ;;  %v910_v4 = vpack.c.bf16 %v906_v59, %v906_v59  ;;  %v909_v11 = vpack.c.bf16 %v905_v3, %v905_v3 }
 0x12c   : > { %v968_v56 = vsel %vm967_vm9, %v964_v53, %v966_v54  ;;  %v969_v57 = vsel %vm967_vm9, %v966_v54, %v964_v53 }
 0x12d   : > { %v981_v60 = vmul.f32 %v2363_v44, %v968_v56  ;;  %v982_v61 = vmul.f32 %v2366_v45, %v969_v57  ;;  %1851 = vmatmul.mubr.msk.bf16.vlgmr.msra.gmra.mrb[4].mxu0 %vm425_vm1, %v1849_v6  ;;  %v915_v13 = vsel %vm429_vm0, %v909_v11, 0 }
 0x12e   : > { %1028 = vmatprep.mubr.bf16.mxu0 %v2079_v1 }
 0x12f   : > { %v985_v0 = vpack.c.bf16 %v981_v60, %v981_v60  ;;  %v986_v2 = vpack.c.bf16 %v982_v61, %v982_v61 }
 0x131   : > { %1842 = vmatmul.mubr.msk.bf16.vlgmr.msra.gmra.mrb[12].mxu1 %vm425_vm1, %v1840_v5  ;;  %1856 = vmatprep.subr.msk.bf16.mxu0 %vm429_vm0, %v986_v2  ;;  %v991_v9 = vsel %vm429_vm0, %v985_v0, 0 }
 0x132   : > { %769 = vmatpush1.bf16.msra.mxu1 %v763_v8  ;;  %997 = vmatpush1.bf16.msra.mxu0 %v991_v9 }
 0x133   : > { %1853 = vmatprep.subr.msk.bf16.mxu1 %vm429_vm0, %v910_v4  ;;  %800 = vmatprep.mubr.bf16.mxu1 %v2079_v1 }
 0x135   : > { %1857 = vmatmul.mubr.msk.bf16.vlgmr.msra.gmra.mrb[8].mxu0 %vm425_vm1, %v1855_v10 }
 0x136   : > { %1165 = vmatprep.mubr.bf16.mxu0 %v2079_v1 }
 0x139   : > { %1848 = vmatmul.mubr.msk.bf16.vlgmr.msra.gmra.mrb[16].mxu1 %vm425_vm1, %v1846_v12 }
 0x13a   : > { %921 = vmatpush1.bf16.msra.mxu1 %v915_v13  ;;  %952 = vmatprep.mubr.bf16.mxu1 %v2079_v1 }
 0x141   : > { %1854 = vmatmul.mubr.msk.bf16.vlgmr.msra.gmra.mrb[20].mxu1 %vm425_vm1, %v1852_v14 }
 0x142   : > { %1115 = vmatprep.mubr.bf16.mxu1 %v2079_v1 }
 0x172   : > { %v726_v15 = vpop.f32.mrb[0].mxu0 }
 0x173   : > { %v728_v17 = vpop.f32.mrb[1].mxu0 }
 0x174   : > { %v730_v18 = vpop.f32.mrb[2].mxu0 }
 0x175   : > { %v731_v21 = vpop.f32.mrb[3].mxu0 }
 0x1ec   : > { %v470_v22 = vpop.f32.mrb[0].mxu1 }
 0x1ed   : > { %v472_v24 = vpop.f32.mrb[1].mxu1 }
 0x1ee   : > { %v474_v26 = vpop.f32.mrb[2].mxu1 }
 0x1ef   : > { %v475_v27 = vpop.f32.mrb[3].mxu1 }
 0x1f4   : > { %v520_v28 = vpop.f32.mrb[4].mxu1 }
 0x1f5   : > { %v521_v31 = vadd.f32 %v520_v28, %v470_v22  ;;  %v522_v32 = vpop.f32.mrb[5].mxu1 }
 0x1f6   : > { %v523_v33 = vadd.f32 %v522_v32, %v472_v24  ;;  %v524_v34 = vpop.f32.mrb[6].mxu1 }
 0x1f7   : > { %v525_v35 = vpop.f32.mrb[7].mxu1 }
 0x1f8   : > { %v1614_v35 = vld [vmem:[%s2739_s6] sm:$0xff] }
 0x1fc   : > { %v594_v36 = vpop.f32.mrb[8].mxu1 }
 0x1fd   : > { %v601_v39 = vadd.f32 %v594_v36, %v521_v31  ;;  %v596_v40 = vpop.f32.mrb[9].mxu1 }
 0x1fe   : > { %v602_v41 = vadd.f32 %v596_v40, %v523_v33  ;;  %v598_v42 = vpop.f32.mrb[10].mxu1 }
 0x1ff   : > { %v599_v46 = vpop.f32.mrb[11].mxu1 }
 0x200   : > { %v878_v48 = vpop.f32.mrb[4].mxu0 }
 0x201   : > { %v880_v49 = vpop.f32.mrb[5].mxu0 }
 0x202   : > { %v882_v50 = vpop.f32.mrb[6].mxu0 }
 0x203   : > { %v883_v52 = vpop.f32.mrb[7].mxu0 }
 0x204   : > { %v670_v6 = vpop.f32.mrb[12].mxu1 }
 0x205   : > { %v677_v53 = vadd.f32 %v670_v6, %v601_v39  ;;  %v672_v54 = vpop.f32.mrb[13].mxu1 }
 0x206   : > { %v678_v56 = vadd.f32 %v672_v54, %v602_v41  ;;  %v674_v57 = vpop.f32.mrb[14].mxu1 }
 0x207   : > { %v675_v58 = vpop.f32.mrb[15].mxu1  ;;  %v733_v59 = vadd.f32 %v726_v15, %v677_v53 }
 0x208   : > { %v734_v60 = vadd.f32 %v728_v17, %v678_v56  ;;  %v1030_v61 = vpop.f32.mrb[8].mxu0  ;;  %v1043_v17 = vpop.permute.xlu0 %1042 }
 0x209   : > { %v1032_v62 = vpop.f32.mrb[9].mxu0 }
 0x20a   : > { %v1034_v5 = vpop.f32.mrb[10].mxu0 }
 0x20b   : > { %v1035_v0 = vpop.f32.mrb[11].mxu0 }
 0x20c   : > { %v802_v2 = vpop.f32.mrb[16].mxu1 }
 0x20d   : > { %v809_v3 = vadd.f32 %v802_v2, %v733_v59  ;;  %v804_v4 = vpop.f32.mrb[17].mxu1  ;;  %v1059_v2 = vld [vmem:[%s2738_s5] sm:$0xf] }
 0x20e   : > { %v810_v8 = vadd.f32 %v804_v4, %v734_v60  ;;  %v806_v9 = vpop.f32.mrb[18].mxu1 }
 0x20f   : > { %v807_v10 = vpop.f32.mrb[19].mxu1  ;;  %v885_v11 = vadd.f32 %v878_v48, %v809_v3 }
 0x210   : > { %v886_v12 = vadd.f32 %v880_v49, %v810_v8 }
 0x214   : > { %v954_v13 = vpop.f32.mrb[20].mxu1 }
 0x215   : > { %v961_v14 = vadd.f32 %v954_v13, %v885_v11  ;;  %v956_v18 = vpop.f32.mrb[21].mxu1 }
 0x216   : > { %v962_v21 = vadd.f32 %v956_v18, %v886_v12  ;;  %v958_v22 = vpop.f32.mrb[22].mxu1  ;;  %v1863_v18 = vld [vmem:[%s2738_s5 + $0x8] sm:$0xf] }
 0x217   : > { %v1037_v24 = vadd.f32 %v1030_v61, %v961_v14  ;;  %v959_v15 = vpop.f32.mrb[23].mxu1 }
 0x218   : > { %v1038_v26 = vadd.f32 %v1032_v62, %v962_v21 }
 0x219   : > { %v1045_v27 = vadd.f32 %v1043_v17, %v1037_v24 }
 0x21a   : > { %v1046_v28 = vadd.f32 %v1043_v17, %v1038_v26 }
 0x21b   : > { %v1047_v31 = vmul.f32 0.2, %v1045_v27 }
 0x21c   : > { %v1048_v32 = vmul.f32 0.2, %v1046_v28 }
 0x21d   : > { %v2420_v33 = vmax.f32 %v1045_v27, %v1047_v31  ;;  %v1866_v31 = vld [vmem:[%s2738_s5 + $0xc] sm:$0xf] }
 0x21e   : > { %v2422_v34 = vmax.f32 %v1046_v28, %v1048_v32 }
 0x21f   : > { %1062 = vrot.lane.b32.xlu1 %v2420_v33, %s2081_s16  ;;  %v1304_v9 = vpack.c.bf16 %v2420_v33, %v2420_v33 }
 0x220   : > { %1064 = vrot.lane.b32.xlu0 %v2422_v34, %s2081_s16  ;;  %s2750_s16 = smov 111   ;;  %v1305_v13 = vpack.c.bf16 %v2422_v34, %v2422_v34 }
 0x221   : > { %v1310_v27 = vsel %vm429_vm0, %v1304_v9, 0 }
 0x223   : > { %1051 = vrot.lane.b32.xlu1 %v2420_v33, %s2080_s14 }
 0x224   : > { %1053 = vrot.lane.b32.xlu0 %v2422_v34, %s2080_s14  ;;  %s2749_s14 = smov 112  }
 0x227   : > { %1174 = vrot.lane.b32.xlu1 %v2420_v33, %s2082_s17 }
 0x228   : > { %1176 = vrot.lane.b32.xlu0 %v2422_v34, %s2082_s17 }
 0x22b   : > { %1238 = vrot.lane.b32.xlu1 %v2420_v33, %s2083_s21 }
 0x22c   : > { %1240 = vrot.lane.b32.xlu0 %v2422_v34, %s2083_s21  ;;  %s321_s21 = sand.u32 1, %s2069_s10  }
 0x22d   : > { %s1747_s28 = scalar_lea.sflag [#allocation3], %s321_s21 }
 0x22f   : > { %1358 = vrot.lane.b32.xlu1 %v2420_v33, %s2084_s22 }
 0x230   : > { %1360 = vrot.lane.b32.xlu0 %v2422_v34, %s2084_s22 }
 0x233   : > { %1422 = vrot.lane.b32.xlu1 %v2420_v33, %s2085_s23 }
 0x234   : > { %1424 = vrot.lane.b32.xlu0 %v2422_v34, %s2085_s23  ;;  %s1885_s23 = sshll.u32 %s2160_s13, 7  ;;  %s2088_s13 = smov [#allocation2]  }
 0x235   : > { %s2691_s27 = scalar_lea.hbm %s2742_s9, %s1885_s23 }
 0x237   : > { %1486 = vrot.lane.b32.xlu1 %v2420_v33, %s2749_s14 }
 0x238   : > { %1488 = vrot.lane.b32.xlu0 %v2422_v34, %s2749_s14 }
 0x23b   : > { %1550 = vrot.lane.b32.xlu1 %v2420_v33, %s2750_s16 }
 0x23c   : > { %1552 = vrot.lane.b32.xlu0 %v2422_v34, %s2750_s16  ;;  %s2019_s16 = sshll.u32 %s2088_s13, 4  ;;  %s2020_s16 = int_to_ptr.vmem [resolvable:$false] %s2019_s16 }
 0x23d   : > { %s2021_s17 = scalar_lea.vmem %s2020_s16, 256 }
 0x23f   : > { %1617 = vperm.xlu1 %2004, %v1614_v35  }
 0x291   : > { %v1063_v36 = vpop.permute.xlu1 %1062 }
 0x292   : > { %v1065_v39 = vpop.permute.xlu0 %1064 }
 0x293   : > { %v1066_v40 = vsel %vm405_vm2, %v1063_v36, %v1065_v39  ;;  %v1067_v41 = vsel %vm405_vm2, %v1065_v39, %v1063_v36 }
 0x294   : > { %v1068_v42 = vmul.f32 %v1067_v41, %v2241_v29  ;;  %v1069_v46 = vmul.f32 %v1066_v40, %v2244_v30  ;;  %v1858_v30 = vld [vmem:[%s2738_s5 + $0x4] sm:$0xf]  ;;  %v1869_v41 = vld [vmem:[%s2738_s5 + $0x10] sm:$0xf] }
 0x295   : > { %v1052_v48 = vpop.permute.xlu1 %1051 }
 0x296   : > { %v1072_v49 = vpack.c.bf16 %v1068_v42, %v1068_v42  ;;  %v1073_v50 = vpack.c.bf16 %v1069_v46, %v1069_v46  ;;  %v1054_v52 = vpop.permute.xlu0 %1053 }
 0x297   : > { %v1055_v6 = vsel %vm382_vm3, %v1052_v48, %v1054_v52  ;;  %v1056_v53 = vsel %vm382_vm3, %v1054_v52, %v1052_v48 }
 0x298   : > { %v1057_v54 = vmul.f32 %v1056_v53, %v2256_v37  ;;  %v1058_v56 = vmul.f32 %v1055_v6, %v2259_v38  ;;  %1859 = vmatprep.subr.msk.bf16.mxu1 %vm429_vm0, %v1073_v50  ;;  %v1078_v29 = vsel %vm429_vm0, %v1072_v49, 0  ;;  %v1872_v53 = vld [vmem:[%s2738_s5 + $0x14] sm:$0xf] }
 0x299   : > { %v1175_v57 = vpop.permute.xlu1 %1174  ;;  %1084 = vmatpush1.bf16.msra.mxu1 %v1078_v29 }
 0x29a   : > { %v1060_v58 = vpack.c.bf16 %v1057_v54, %v1057_v54  ;;  %v1061_v59 = vpack.c.bf16 %v1058_v56, %v1058_v56  ;;  %v1177_v60 = vpop.permute.xlu0 %1176 }
 0x29b   : > { %v1178_v61 = vsel %vm531_vm4, %v1175_v57, %v1177_v60  ;;  %v1179_v37 = vsel %vm531_vm4, %v1177_v60, %v1175_v57 }
 0x29c   : > { %v1180_v38 = vmul.f32 %v1179_v37, %v2271_v47  ;;  %v1181_v62 = vmul.f32 %v1178_v61, %v2278_v51  ;;  %1860 = vmatmul.mubr.msk.bf16.vlgmr.msra.gmra.mrb[24].mxu1 %vm425_vm1, %v1858_v30  ;;  %1861 = vmatprep.subr.msk.bf16.mxu0 %vm429_vm0, %v1061_v59  ;;  %v1128_v5 = vsel %vm429_vm0, %v1060_v58, 0  ;;  %v1875_v59 = vld [vmem:[%s2738_s5 + $0x18] sm:$0xf]  ;;  %v1881_v37 = vld [vmem:[%s2738_s5 + $0x20] sm:$0xf] }
 0x29d   : > { %v1239_v0 = vpop.permute.xlu1 %1238  ;;  %1134 = vmatpush1.bf16.msra.mxu0 %v1128_v5  ;;  %1227 = vmatprep.mubr.bf16.mxu1 %v2079_v1 }
 0x29e   : > { %v1184_v3 = vpack.c.bf16 %v1180_v38, %v1180_v38  ;;  %v1185_v4 = vpack.c.bf16 %v1181_v62, %v1181_v62  ;;  %v1241_v8 = vpop.permute.xlu0 %1240 }
 0x29f   : > { %v1242_v47 = vsel %vm607_vm5, %v1239_v0, %v1241_v8  ;;  %v1243_v51 = vsel %vm607_vm5, %v1241_v8, %v1239_v0 }
 0x2a0   : > { %v1244_v10 = vmul.f32 %v1243_v51, %v2303_v7  ;;  %v1245_v11 = vmul.f32 %v1242_v47, %v2297_v63  ;;  %1862 = vmatmul.mubr.msk.bf16.vlgmr.msra.gmra.mrb[12].mxu0 %vm425_vm1, %v1059_v2  ;;  %1864 = vmatprep.subr.msk.bf16.mxu1 %vm429_vm0, %v1185_v4  ;;  %v1190_v12 = vsel %vm429_vm0, %v1184_v3, 0 }
 0x2a1   : > { %v1359_v14 = vpop.permute.xlu1 %1358  ;;  %1196 = vmatpush1.bf16.msra.mxu1 %v1190_v12  ;;  %1291 = vmatprep.mubr.bf16.mxu0 %v2079_v1 }
 0x2a2   : > { %v1248_v7 = vpack.c.bf16 %v1244_v10, %v1244_v10  ;;  %v1249_v21 = vpack.c.bf16 %v1245_v11, %v1245_v11  ;;  %v1361_v63 = vpop.permute.xlu0 %1360  ;;  %1870 = vmatprep.subr.msk.bf16.mxu1 %vm429_vm0, %v1305_v13 }
 0x2a3   : > { %v1362_v22 = vsel %vm739_vm6, %v1359_v14, %v1361_v63  ;;  %v1363_v24 = vsel %vm739_vm6, %v1361_v63, %v1359_v14 }
 0x2a4   : > { %v1364_v15 = vmul.f32 %v1362_v22, %v2337_v23  ;;  %v1365_v17 = vmul.f32 %v1363_v24, %v2320_v16  ;;  %1865 = vmatmul.mubr.msk.bf16.vlgmr.msra.gmra.mrb[28].mxu1 %vm425_vm1, %v1863_v18  ;;  %1867 = vmatprep.subr.msk.bf16.mxu0 %vm429_vm0, %v1249_v21  ;;  %v1254_v26 = vsel %vm429_vm0, %v1248_v7, 0 }
 0x2a5   : > { %v1423_v28 = vpop.permute.xlu1 %1422  ;;  %1260 = vmatpush1.bf16.msra.mxu0 %v1254_v26  ;;  %1316 = vmatpush1.bf16.msra.mxu1 %v1310_v27 }
 0x2a6   : > { %v1368_v32 = vpack.c.bf16 %v1364_v15, %v1364_v15  ;;  %v1369_v33 = vpack.c.bf16 %v1365_v17, %v1365_v17  ;;  %v1425_v23 = vpop.permute.xlu0 %1424  ;;  %1347 = vmatprep.mubr.bf16.mxu1 %v2079_v1 }
 0x2a7   : > { %v1426_v16 = vsel %vm815_vm7, %v1423_v28, %v1425_v23  ;;  %v1427_v34 = vsel %vm815_vm7, %v1425_v23, %v1423_v28 }
 0x2a8   : > { %v1428_v35 = vmul.f32 %v1426_v16, %v2327_v19  ;;  %v1429_v36 = vmul.f32 %v1427_v34, %v2330_v20  ;;  %1868 = vmatmul.mubr.msk.bf16.vlgmr.msra.gmra.mrb[16].mxu0 %vm425_vm1, %v1866_v31  ;;  %1873 = vmatprep.subr.msk.bf16.mxu0 %vm429_vm0, %v1369_v33  ;;  %v1374_v39 = vsel %vm429_vm0, %v1368_v32, 0 }
 0x2a9   : > { %v1487_v40 = vpop.permute.xlu1 %1486  ;;  %1380 = vmatpush1.bf16.msra.mxu0 %v1374_v39  ;;  %1411 = vmatprep.mubr.bf16.mxu0 %v2079_v1 }
 0x2aa   : > { %v1432_v42 = vpack.c.bf16 %v1428_v35, %v1428_v35  ;;  %v1433_v46 = vpack.c.bf16 %v1429_v36, %v1429_v36  ;;  %v1489_v48 = vpop.permute.xlu0 %1488 }
 0x2ab   : > { %v1490_v19 = vsel %vm891_vm8, %v1487_v40, %v1489_v48  ;;  %v1491_v20 = vsel %vm891_vm8, %v1489_v48, %v1487_v40 }
 0x2ac   : > { %v1492_v49 = vmul.f32 %v1490_v19, %v2381_v55  ;;  %v1493_v50 = vmul.f32 %v1491_v20, %v2359_v43  ;;  %1871 = vmatmul.mubr.msk.bf16.vlgmr.msra.gmra.mrb[32].mxu1 %vm425_vm1, %v1869_v41  ;;  %1876 = vmatprep.subr.msk.bf16.mxu1 %vm429_vm0, %v1433_v46  ;;  %v1438_v52 = vsel %vm429_vm0, %v1432_v42, 0 }
 0x2ad   : > { %v1551_v6 = vpop.permute.xlu1 %1550  ;;  %1444 = vmatpush1.bf16.msra.mxu1 %v1438_v52  ;;  %1475 = vmatprep.mubr.bf16.mxu1 %v2079_v1 }
 0x2ae   : > { %v1496_v54 = vpack.c.bf16 %v1492_v49, %v1492_v49  ;;  %v1497_v56 = vpack.c.bf16 %v1493_v50, %v1493_v50  ;;  %v1553_v29 = vpop.permute.xlu0 %1552 }
 0x2af   : > { %v1554_v43 = vsel %vm967_vm9, %v1551_v6, %v1553_v29  ;;  %v1555_v55 = vsel %vm967_vm9, %v1553_v29, %v1551_v6 }
 0x2b0   : > { %v1556_v57 = vmul.f32 %v1554_v43, %v2363_v44  ;;  %v1557_v30 = vmul.f32 %v1555_v55, %v2366_v45  ;;  %1874 = vmatmul.mubr.msk.bf16.vlgmr.msra.gmra.mrb[20].mxu0 %vm425_vm1, %v1872_v53  ;;  %1879 = vmatprep.subr.msk.bf16.mxu0 %vm429_vm0, %v1497_v56  ;;  %v1502_v58 = vsel %vm429_vm0, %v1496_v54, 0  ;;  %v1878_v45 = vld [vmem:[%s2738_s5 + $0x1c] sm:$0xf] }
 0x2b1   : > { %1508 = vmatpush1.bf16.msra.mxu0 %v1502_v58  ;;  %1539 = vmatprep.mubr.bf16.mxu0 %v2079_v1 }
 0x2b2   : > { %v1560_v60 = vpack.c.bf16 %v1556_v57, %v1556_v57  ;;  %v1561_v61 = vpack.c.bf16 %v1557_v30, %v1557_v30 }
 0x2b4   : > { %1877 = vmatmul.mubr.msk.bf16.vlgmr.msra.gmra.mrb[36].mxu1 %vm425_vm1, %v1875_v59  ;;  %1882 = vmatprep.subr.msk.bf16.mxu1 %vm429_vm0, %v1561_v61  ;;  %v1566_v44 = vsel %vm429_vm0, %v1560_v60, 0  ;;  %v1658_v59 = vld [vmem:[%s2741_s8 + $0x80] sm:$0xff]  ;;  %v1659_v60 = vld [vmem:[%s2741_s8 + $0x88] sm:$0xff] }
 0x2b5   : > { %1572 = vmatpush1.bf16.msra.mxu1 %v1566_v44  ;;  %1603 = vmatprep.mubr.bf16.mxu1 %v2079_v1  ;;  %v1642_v61 = vld [vmem:[%s2741_s8] sm:$0xff] }
 0x2b8   : > { %1880 = vmatmul.mubr.msk.bf16.vlgmr.msra.gmra.mrb[24].mxu0 %vm425_vm1, %v1878_v45  ;;  %v1923_v45 = vpack.c.bf16 %v1659_v60, %v1658_v59 }
 0x2ba   : > { %1924 = vmatprep.subr.bf16.mxu0 %v1923_v45 }
 0x2bc   : > { %1883 = vmatmul.mubr.msk.bf16.vlgmr.msra.gmra.mrb[40].mxu1 %vm425_vm1, %v1881_v37  ;;  %v1643_v37 = vld [vmem:[%s2741_s8 + $0x8] sm:$0xff] }
 0x2be   : > { %v1618_v6 = vpop.permute.xlu1 %1617 }
 0x36f   : > { %v1117_v38 = vpop.f32.mrb[24].mxu1 }
 0x370   : > { %v1119_v62 = vpop.f32.mrb[25].mxu1 }
 0x371   : > { %v1121_v5 = vpop.f32.mrb[26].mxu1 }
 0x372   : > { %v1122_v0 = vpop.f32.mrb[27].mxu1 }
 0x373   : > { %v1167_v2 = vpop.f32.mrb[12].mxu0  ;;  %v1925_v0 = vpack.c.bf16 %v1643_v37, %v1642_v61 }
 0x374   : > { %v1168_v3 = vadd.f32 %v1167_v2, %v1117_v38  ;;  %v1169_v4 = vpop.f32.mrb[13].mxu0  ;;  %v1660_v38 = vld [vmem:[%s2741_s8 + $0x90] sm:$0xff] }
 0x375   : > { %v1170_v8 = vadd.f32 %v1169_v4, %v1119_v62  ;;  %v1171_v47 = vpop.f32.mrb[14].mxu0  ;;  %v1661_v62 = vld [vmem:[%s2741_s8 + $0x98] sm:$0xff]  ;;  %1926 = vmatpush3.bf16.msra.mxu0 %v1925_v0 }
 0x376   : > { %v1172_v51 = vpop.f32.mrb[15].mxu0  ;;  %v1927_v2 = vpack.c.bf16 %v1661_v62, %v1660_v38  ;;  %v1645_v4 = vld [vmem:[%s2741_s8 + $0x18] sm:$0xff]  ;;  %v1663_v47 = vld [vmem:[%s2741_s8 + $0xa8] sm:$0xff] }
 0x377   : > { %v1229_v9 = vpop.f32.mrb[28].mxu1 }
 0x378   : > { %v1236_v1 = vadd.f32 %v1229_v9, %v1168_v3  ;;  %v1231_v10 = vpop.f32.mrb[29].mxu1  ;;  %v1644_v3 = vld [vmem:[%s2741_s8 + $0x10] sm:$0xff]  ;;  %1928 = vmatprep.subr.bf16.mxu0 %v1927_v2 }
 0x379   : > { %v1237_v11 = vadd.f32 %v1231_v10, %v1170_v8  ;;  %v1233_v12 = vpop.f32.mrb[30].mxu1  ;;  %v1662_v8 = vld [vmem:[%s2741_s8 + $0xa0] sm:$0xff]  ;;  %v1929_v9 = vpack.c.bf16 %v1645_v4, %v1644_v3 }
 0x37a   : > { %v1234_v13 = vpop.f32.mrb[31].mxu1  ;;  %v1646_v10 = vld [vmem:[%s2741_s8 + $0x20] sm:$0xff]  ;;  %v1664_v12 = vld [vmem:[%s2741_s8 + $0xb0] sm:$0xff] }
 0x37b   : > { %v1293_v14 = vpop.f32.mrb[16].mxu0  ;;  %v1665_v13 = vld [vmem:[%s2741_s8 + $0xb8] sm:$0xff]  ;;  %1930 = vmatpush3.bf16.msra.mxu0 %v1929_v9 }
 0x37c   : > { %v1300_v18 = vadd.f32 %v1293_v14, %v1236_v1  ;;  %v1295_v7 = vpop.f32.mrb[17].mxu0  ;;  %v1931_v1 = vpack.c.bf16 %v1663_v47, %v1662_v8 }
 0x37d   : > { %v1301_v21 = vadd.f32 %v1295_v7, %v1237_v11  ;;  %v1297_v63 = vpop.f32.mrb[18].mxu0  ;;  %v1647_v11 = vld [vmem:[%s2741_s8 + $0x28] sm:$0xff]  ;;  %v1648_v7 = vld [vmem:[%s2741_s8 + $0x30] sm:$0xff] }
 0x37e   : > { %v1298_v22 = vpop.f32.mrb[19].mxu0  ;;  %v1933_v14 = vpack.c.bf16 %v1647_v11, %v1646_v10  ;;  %1932 = vmatprep.subr.bf16.mxu0 %v1931_v1  ;;  %v1666_v63 = vld [vmem:[%s2741_s8 + $0xc0] sm:$0xff] }
 0x37f   : > { %v1349_v24 = vpop.f32.mrb[32].mxu1  ;;  %v1667_v22 = vld [vmem:[%s2741_s8 + $0xc8] sm:$0xff] }
 0x380   : > { %v1356_v15 = vadd.f32 %v1349_v24, %v1300_v18  ;;  %v1351_v17 = vpop.f32.mrb[33].mxu1  ;;  %v1935_v18 = vpack.c.bf16 %v1665_v13, %v1664_v12  ;;  %1934 = vmatpush3.bf16.msra.mxu0 %v1933_v14 }
 0x381   : > { %v1357_v26 = vadd.f32 %v1351_v17, %v1301_v21  ;;  %v1353_v27 = vpop.f32.mrb[34].mxu1  ;;  %v1649_v21 = vld [vmem:[%s2741_s8 + $0x38] sm:$0xff]  ;;  %v1650_v17 = vld [vmem:[%s2741_s8 + $0x40] sm:$0xff] }
 0x382   : > { %v1354_v28 = vpop.f32.mrb[35].mxu1  ;;  %v1937_v24 = vpack.c.bf16 %v1649_v21, %v1648_v7  ;;  %1936 = vmatprep.subr.bf16.mxu0 %v1935_v18  ;;  %v1668_v27 = vld [vmem:[%s2741_s8 + $0xd0] sm:$0xff] }
 0x383   : > { %v1413_v31 = vpop.f32.mrb[20].mxu0  ;;  %v1669_v28 = vld [vmem:[%s2741_s8 + $0xd8] sm:$0xff] }
 0x384   : > { %v1420_v32 = vadd.f32 %v1413_v31, %v1356_v15  ;;  %v1415_v33 = vpop.f32.mrb[21].mxu0  ;;  %v1939_v15 = vpack.c.bf16 %v1667_v22, %v1666_v63  ;;  %1938 = vmatpush3.bf16.msra.mxu0 %v1937_v24 }
 0x385   : > { %v1421_v23 = vadd.f32 %v1415_v33, %v1357_v26  ;;  %v1417_v16 = vpop.f32.mrb[22].mxu0  ;;  %v1651_v26 = vld [vmem:[%s2741_s8 + $0x48] sm:$0xff]  ;;  %v1652_v33 = vld [vmem:[%s2741_s8 + $0x50] sm:$0xff] }
 0x386   : > { %v1418_v34 = vpop.f32.mrb[23].mxu0  ;;  %v1941_v31 = vpack.c.bf16 %v1651_v26, %v1650_v17  ;;  %1940 = vmatprep.subr.bf16.mxu0 %v1939_v15  ;;  %v1670_v16 = vld [vmem:[%s2741_s8 + $0xe0] sm:$0xff] }
 0x387   : > { %v1477_v35 = vpop.f32.mrb[36].mxu1  ;;  %v1671_v34 = vld [vmem:[%s2741_s8 + $0xe8] sm:$0xff] }
 0x388   : > { %v1484_v36 = vadd.f32 %v1477_v35, %v1420_v32  ;;  %v1479_v39 = vpop.f32.mrb[37].mxu1  ;;  %v1943_v32 = vpack.c.bf16 %v1669_v28, %v1668_v27  ;;  %1942 = vmatpush3.bf16.msra.mxu0 %v1941_v31 }
 0x389   : > { %v1485_v40 = vadd.f32 %v1479_v39, %v1421_v23  ;;  %v1481_v41 = vpop.f32.mrb[38].mxu1  ;;  %v1653_v23 = vld [vmem:[%s2741_s8 + $0x58] sm:$0xff]  ;;  %v1654_v39 = vld [vmem:[%s2741_s8 + $0x60] sm:$0xff] }
 0x38a   : > { %v1482_v42 = vpop.f32.mrb[39].mxu1  ;;  %v1945_v35 = vpack.c.bf16 %v1653_v23, %v1652_v33  ;;  %1944 = vmatprep.subr.bf16.mxu0 %v1943_v32 }
 0x38b   : > { %v1541_v46 = vpop.f32.mrb[24].mxu0  ;;  %v1672_v42 = vld [vmem:[%s2741_s8 + $0xf0] sm:$0xff] }
 0x38c   : > { %v1548_v48 = vadd.f32 %v1541_v46, %v1484_v36  ;;  %v1543_v19 = vpop.f32.mrb[25].mxu0  ;;  %v1947_v36 = vpack.c.bf16 %v1671_v34, %v1670_v16  ;;  %1946 = vmatpush3.bf16.msra.mxu0 %v1945_v35  ;;  %v1673_v46 = vld [vmem:[%s2741_s8 + $0xf8] sm:$0xff] }
 0x38d   : > { %v1549_v20 = vadd.f32 %v1543_v19, %v1485_v40  ;;  %v1545_v49 = vpop.f32.mrb[26].mxu0  ;;  %v1655_v40 = vld [vmem:[%s2741_s8 + $0x68] sm:$0xff]  ;;  %v1656_v19 = vld [vmem:[%s2741_s8 + $0x70] sm:$0xff] }
 0x38e   : > { %v1546_v50 = vpop.f32.mrb[27].mxu0  ;;  %v1949_v41 = vpack.c.bf16 %v1655_v40, %v1654_v39  ;;  %1948 = vmatprep.subr.bf16.mxu0 %v1947_v36 }
 0x38f   : > { %v1605_v52 = vpop.f32.mrb[40].mxu1 }
 0x390   : > { %v1612_v53 = vadd.f32 %v1605_v52, %v1548_v48  ;;  %v1607_v54 = vpop.f32.mrb[41].mxu1  ;;  %1950 = vmatpush3.bf16.msra.mxu0 %v1949_v41  ;;  %v1951_v48 = vpack.c.bf16 %v1673_v46, %v1672_v42 }
 0x391   : > { %v1613_v56 = vadd.f32 %v1607_v54, %v1549_v20  ;;  %v1609_v29 = vpop.f32.mrb[42].mxu1  ;;  %v1657_v20 = vld [vmem:[%s2741_s8 + $0x78] sm:$0xff] }
 0x392   : > { %v1620_v43 = vadd.f32 %v1618_v6, %v1612_v53  ;;  %v1610_v55 = vpop.f32.mrb[43].mxu1  ;;  %v1953_v49 = vpack.c.bf16 %v1657_v20, %v1656_v19  ;;  %1952 = vmatprep.subr.bf16.mxu0 %v1951_v48 }
 0x393   : > { %v1621_v57 = vadd.f32 %v1618_v6, %v1613_v56 }
 0x394   : > { %v1622_v30 = vmul.f32 0.2, %v1620_v43  ;;  %1954 = vmatpush3.bf16.msra.mxu0 %v1953_v49 }
 0x395   : > { %v1623_v58 = vmul.f32 0.2, %v1621_v57 }
 0x396   : > { %v2581_v44 = vmax.f32 %v1620_v43, %v1622_v30 }
 0x397   : > { %v2592_v5 = vmax.f32 %v1621_v57, %v1623_v58 }
 0x399   : > { %v2005_v51 = vpack.i.bf16 %v2592_v5, %v2581_v44 }
 0x39b   : > { %2006 = vrot.lane.b32.xlu0 %v2005_v51, %s2084_s22  ;;  %s1823_s22 = sshll.u32 %s321_s21, 3 }
 0x39c   : > { %s323_s24 = scalar_lea.vmem [#allocation2], %s1823_s22 }
 0x39d   : > { %s1760_s25 = sshll.u32 %s323_s24, 4  ;;  %s2693_s25 = int_to_ptr.vmem [resolvable:$true] %s1760_s25 }
 0x39e   : > { %s2015_s29 = scalar_lea.vmem %s2693_s25, 128  ;;  %p2022_p0 = scmp.lt.s32.totalorder %s2693_s25, %s2020_s16 }
 0x39f   : > { %p2016_p11 = scmp.ne.s32.totalorder %s2693_s25, %s2015_s29  ;;  %p2023_p1 = scmp.lt.s32.totalorder %s2021_s17, %s2015_s29 }
 0x3a1   : > { %p2017_p12 = pnand %p2016_p11, %p2177_p5  ;;  %p2024_p2 = por %p2023_p1, %p2022_p0 }
 0x3a3   : > { %p2018_p13 = pneg %p2017_p12 }
 0x3a5   : > { %p2025_p3 = pnand %p2024_p2, %p2018_p13 }
 0x40d   : > { %v2007_v50 = vpop.permute.xlu0 %2006 }
 0x40e   : > { %v2009_v52 = vunpack.i.h.bf16 %v2007_v50  ;;  %v2008_v6 = vunpack.i.l.bf16 %v2007_v50 }
 0x410   : > { %v1630_v53 = vsel %vm739_vm6, %v2008_v6, %v2009_v52  ;;  %v1631_v54 = vsel %vm739_vm6, %v2009_v52, %v2008_v6 }
 0x411   : > { %v1632_v56 = vmax.f32 %v2581_v44, %v1630_v53  ;;  %v1633_v29 = vmax.f32 %v2592_v5, %v1631_v54 }
 0x413   : > { %v2010_v43 = vpack.i.bf16 %v1633_v29, %v1632_v56 }
 0x415   : > { %2011 = vrot.lane.b32.xlu1 %v2010_v43, %s2749_s14 }
 0x487   : > { %v2012_v55 = vpop.permute.xlu1 %2011 }
 0x488   : > { %v2014_v57 = vunpack.i.h.bf16 %v2012_v55  ;;  %v2013_v30 = vunpack.i.l.bf16 %v2012_v55 }
 0x48a   : > { %v1638_v58 = vsel %vm891_vm8, %v2013_v30, %v2014_v57  ;;  %v1639_v59 = vsel %vm891_vm8, %v2014_v57, %v2013_v30 }
 0x48b   : > { %v1640_v60 = vmax.f32 %v1632_v56, %v1638_v58  ;;  %v1641_v61 = vmax.f32 %v1633_v29, %v1639_v59 }
 0x48d   : > { %1738 = vmatprep.mubr.f32.mxu0 %v1641_v61 }
 0x48e   : > { %1739 = vmatmul.mubr.f32.vlgmr.msra.gmra.mrb[28].mxu0 %v1640_v60 }
 0x561   : > { %v1920_v44 = vpop.f32.mrb[28].mxu0 }
 0x562   : > { %v1921_v45 = vpop.f32.mrb[29].mxu0 }
 0x563   : > { %v1922_v37 = vadd.f32 %v1921_v45, %v1920_v44 }
 0x565   : > { %1745 = vst.msk [vmem:[%s323_s24] sm:$0xff] %vm1744_vm10, %v1922_v37 }
 0x566   : > { %2028 = shalt.err (!%p2025_p3)
}
 0x567   : > { %s2029_s21 = scalar_lea.hbm %s2691_s27, 128  ;;  %s2033_s24 = scalar_lea.hbm %s2742_s9, 256 }
 0x568   : > { %p2030_p4 = scmp.ne.s32.totalorder %s2691_s27, %s2029_s21  ;;  %p2034_p9 = scmp.lt.u32.totalorder %s2691_s27, %s2742_s9 }
 0x569   : > { %p2035_p10 = scmp.lt.u32.totalorder %s2033_s24, %s2029_s21  ;;  %p2037_p12 = scmp.lt.u32.totalorder %s2029_s21, %s2691_s27 }
 0x56a   : > { %p2031_p7 = pnand %p2030_p4, %p2177_p5 }
 0x56b   : > { %p2036_p11 = por %p2035_p10, %p2034_p9 }
 0x56c   : > { %p2032_p8 = pneg %p2031_p7 }
 0x56d   : > { %p2038_p13 = por %p2037_p12, %p2036_p11 }
 0x56f   : > { %p2039_p0 = pnand %p2038_p13, %p2032_p8 }
 0x571   : > { %2042 = shalt.err (!%p2039_p0)
}
 0x572   : > { %1955 = dma.vmem_to_hbm [thread:$0]  (%p2177_p5), %s2693_s25, 128, %s2691_s27, %s1747_s28  }
 0x573 PF: > { %p1961_p1 = scmp.ge.s32.totalorder %s2077_s12, 2  ;;  %s1772_s29 = sand.u32 1, %s2065_s30  }
 0x574   : > { %s1773_s13 = scalar_lea.sflag [#allocation3], %s1772_s29 }
 0x575   : > { %p1958_p2 = pnand %p1961_p1, %p2181_p6 }
 0x577   : > { %2060 = dma.done.wait (!%p1958_p2), %s1773_s13, 128  }
 0x578   : > { %2062 = vsyncadd (!%p1958_p2), %s1773_s13, 4294967168  ;;  %p19_p3 = scmp.ge.s32.totalorder %s2164_s15, 4   ;;  %s2751_s30 = smov %s2069_s10 }
 0x579   : > { %s2752_s10 = smov %s2073_s11  ;;  %s2753_s11 = smov %s2175_s18 }
 0x57a   : > { %s2754_s12 = smov %s2164_s15  ;;  %21 = sbr.rel (!%p19_p3) target bundleno = 3 (0x3), region = 114 }
 0x581   :  { %1778 = vsyncpa [#allocation3], 1 }
 0x582   :  { %1780 = vsyncpa [#allocation3 + $0x1], 1 }

</bundles_post_ra>
